<compile_context>
chip_gen: v7x
topology: tpu7x:2x2x1
jax: 0.10.0
libtpu: 0.0.40
codegen_flags: <defaults>
</compile_context>

<pallas_src>
import functools
import math

import jax
import jax.numpy as jnp
from jax import lax
from jax.experimental import pallas as pl
from jax.experimental.pallas import tpu as pltpu

# ---------------- config (small, synthetic) ----------------
D_MODEL = 32
D_INNER = 64
D_XB = 32
D_STATE = 16
D_CONV = 4
DT_RANK = math.ceil(D_MODEL / 16)          # 2
INTERMEDIATE = 64
RMS_EPS = 1e-5
BATCH = 2
SEQLEN = 8

NUM_XB_HEAD = D_XB // D_STATE              # 2
NUM_C_HEAD = D_INNER // D_STATE            # 4
REPEAT_GROUP = NUM_C_HEAD // NUM_XB_HEAD   # 2


# ---------------- small in-kernel math helpers ----------------
def _sigmoid(x):
    # tanh-based logistic: no inf intermediates for large |x|, runs on the EUP.
    return 0.5 * (jnp.tanh(0.5 * x) + 1.0)


def _silu(x):
    return x * _sigmoid(x)


def _softplus(x):
    xs = jnp.minimum(x, 20.0)
    return jnp.where(x > 20.0, x, jnp.log(1.0 + jnp.exp(xs)))


def _expand_heads(x, n_src, d_state, sel):
    """x: (R, n_src*d_state) -> (R, d_state, d_out) with
    out[r, n, c] = x[r, grp(c)*d_state + n], where grp(c) is encoded by the
    constant one-hot expansion matrix sel of shape (n_src, d_out)."""
    r = x.shape[0]
    x3 = jnp.transpose(x.reshape(r, n_src, d_state), (0, 2, 1))   # (R, d_state, n_src)
    flat = x3.reshape(r * d_state, n_src)
    out = jnp.dot(flat, sel, preferred_element_type=jnp.float32)  # (R*d_state, d_out)
    return out.reshape(r, d_state, sel.shape[1])


# ---------------- the single fused layer kernel ----------------
def _fused_layer_kernel(x_ref, w_in_ref, vec_ref, mat_ref, w_out_ref, w_gu_ref,
                        w_dn_ref, o_ref, *, eps, batch, seqlen, d_state,
                        n_xb_head, n_c_head, d_conv):
    f32 = jnp.float32
    B, L = batch, seqlen
    BL = B * L
    DS = d_state

    x = x_ref[...].astype(f32)                                  # (BL, d_model)
    d_inner = w_out_ref.shape[0]

    # ---- unpack the packed small-parameter slabs ----
    dt_b = vec_ref[0:1, :].astype(f32)                          # (1, d_inner)
    conv_b = vec_ref[1:2, :].astype(f32)
    d_par = vec_ref[2:3, :].astype(f32)
    conv_w = vec_ref[3:3 + d_conv, :].astype(f32)               # (K, d_inner)
    a_neg = mat_ref[0:DS, :].astype(f32)                        # (DS, d_inner) = -exp(A_log)^T
    sel_c = mat_ref[DS:DS + n_c_head, :].astype(f32)            # (n_c_head, d_inner)
    sel_b = mat_ref[DS + n_c_head:DS + n_c_head + n_xb_head, :].astype(f32)

    # ---- input RMSNorm (gamma folded into w_in) ----
    var = jnp.mean(x * x, axis=-1, keepdims=True)
    xn = x * lax.rsqrt(var + eps)

    # ---- fused in_proj: [ z | x(head-repeated) | C | dt | B ] ----
    proj = jnp.dot(xn.astype(w_in_ref.dtype), w_in_ref[...],
                   preferred_element_type=f32)                  # (BL, 4*d_inner + d_xb)
    z = proj[:, 0:d_inner]
    xr = proj[:, d_inner:2 * d_inner]
    cc = proj[:, 2 * d_inner:3 * d_inner]
    dt = proj[:, 3 * d_inner:4 * d_inner] + dt_b
    bb = proj[:, 4 * d_inner:]                                  # (BL, n_xb_head*DS)

    # ---- causal depthwise conv1d (+bias) + SiLU, causal per sequence ----
    lp = lax.broadcasted_iota(jnp.int32, (BL, 1), 0) % L        # position within sequence
    acc = xr * conv_w[d_conv - 1:d_conv, :] + conv_b
    for s in range(1, d_conv):
        shifted = jnp.concatenate(
            [jnp.zeros((s, d_inner), f32), xr[:BL - s, :]], axis=0)
        shifted = jnp.where(lp >= s, shifted, 0.0)              # no leak across sequences
        acc = acc + shifted * conv_w[d_conv - 1 - s:d_conv - s, :]
    u = _silu(acc)                                              # (BL, d_inner)

    # ---- pre-scan slabs (all off the recurrence critical path) ----
    delta = _softplus(dt)                                       # (BL, d_inner)
    du = delta * u
    zg = _silu(z)
    da = jnp.exp(delta[:, None, :] * a_neg[None, :, :])         # (BL, DS, d_inner)
    c_exp = _expand_heads(cc, n_c_head, DS, sel_c)              # (BL, DS, d_inner)
    b_exp = _expand_heads(bb, n_xb_head, DS, sel_b)             # (BL, DS, d_inner)
    dbu = b_exp * du[:, None, :]                                # (BL, DS, d_inner)

    # ---- selective scan: pure VPU state update + XLU sublane-reduce readout ----
    # TODO(synk): for long sequences switch this static unroll to lax.fori_loop
    # (bounded live set); at L=8 the full unroll is optimal.
    rows = []
    for b in range(B):
        h = jnp.zeros((DS, d_inner), f32)
        for t in range(L):
            r = b * L + t
            h = da[r] * h + dbu[r]
            rows.append(jnp.sum(c_exp[r] * h, axis=0, keepdims=True))  # (1, d_inner)
    y = jnp.concatenate(rows, axis=0)                           # (BL, d_inner)
    y = (y + u * d_par) * zg

    # ---- out_proj + residual ----
    h2 = jnp.dot(y.astype(w_out_ref.dtype), w_out_ref[...],
                 preferred_element_type=f32) + x                # (BL, d_model)

    # ---- post-attention RMSNorm (gamma folded) + gated MLP + residual ----
    var2 = jnp.mean(h2 * h2, axis=-1, keepdims=True)
    hn = h2 * lax.rsqrt(var2 + eps)
    inter = w_dn_ref.shape[0]
    gu = jnp.dot(hn.astype(w_gu_ref.dtype), w_gu_ref[...],
                 preferred_element_type=f32)                    # (BL, 2*inter)
    act = _silu(gu[:, :inter]) * gu[:, inter:]
    out = jnp.dot(act.astype(w_dn_ref.dtype), w_dn_ref[...],
                  preferred_element_type=f32) + h2              # (BL, d_model)

    o_ref[...] = out.astype(o_ref.dtype)


# ---------------- parameter init (torch layout, deterministic, synthetic) ----------------
def init_params(key):
    ks = jax.random.split(key, 10)
    s = 0.05
    p = {}
    p["ln1_w"] = jnp.ones((D_MODEL,), jnp.float32)
    p["ln2_w"] = jnp.ones((D_MODEL,), jnp.float32)
    # in_proj rows: [z(d_inner), x(d_xb), B(d_xb), C(d_inner), dt(dt_rank)]
    p["in_proj_w"] = jax.random.normal(ks[0], (2 * D_XB + 2 * D_INNER + DT_RANK, D_MODEL)) * s
    p["conv_w"] = jax.random.normal(ks[1], (D_INNER, 1, D_CONV)) * 0.2     # torch Conv1d (C,1,K)
    p["conv_b"] = jax.random.normal(ks[2], (D_INNER,)) * 0.1
    p["dt_proj_w"] = jax.random.normal(ks[3], (D_INNER, DT_RANK)) * 0.5
    p["dt_proj_b"] = jax.random.normal(ks[4], (D_INNER,)) * 0.1 - 2.0
    a = jnp.broadcast_to(jnp.arange(1, D_STATE + 1, dtype=jnp.float32), (D_INNER, D_STATE))
    p["a_log"] = jnp.log(a)                                                # (d_inner, d_state)
    p["d_param"] = jnp.ones((D_INNER,), jnp.float32)
    p["out_proj_w"] = jax.random.normal(ks[5], (D_MODEL, D_INNER)) * s
    p["gate_w"] = jax.random.normal(ks[6], (INTERMEDIATE, D_MODEL)) * s
    p["up_w"] = jax.random.normal(ks[7], (INTERMEDIATE, D_MODEL)) * s
    p["down_w"] = jax.random.normal(ks[8], (D_MODEL, INTERMEDIATE)) * s
    return p


def prepare_params(p):
    """One-time layout prep OUTSIDE the forward: split/transpose in_proj, fold the
    GQA head repeat + low-rank dt projection + RMSNorm gammas into the weights,
    fuse gate/up, and pack all small vectors into two slabs."""
    f32 = jnp.float32
    bf16 = jnp.bfloat16
    ln1 = p["ln1_w"].astype(f32)
    ln2 = p["ln2_w"].astype(f32)

    w = p["in_proj_w"].astype(f32)
    i0 = D_INNER
    i1 = i0 + D_XB
    i2 = i1 + D_XB
    i3 = i2 + D_INNER
    wz, wx, wb, wc, wdt = w[:i0], w[i0:i1], w[i1:i2], w[i2:i3], w[i3:]

    # GQA-style repeat_interleave of the x heads folded into projection columns:
    # x_exp[:, c] = x[:, (c // (REPEAT_GROUP*D_STATE)) * D_STATE + c % D_STATE]
    c_idx = jnp.arange(D_INNER)
    src = (c_idx // (REPEAT_GROUP * D_STATE)) * D_STATE + (c_idx % D_STATE)
    wxr_t = wx.T[:, src]                                        # (d_model, d_inner)

    # low-rank dt projection folded into one (d_model, d_inner) matrix
    w_dt_full = wdt.T @ p["dt_proj_w"].astype(f32).T

    # fused in_proj [z | x_rep | C | dt | B]; input-RMSNorm gamma folded into rows
    w_in = jnp.concatenate([wz.T, wxr_t, wc.T, w_dt_full, wb.T], axis=1)
    w_in = ln1[:, None] * w_in                                  # (d_model, 4*d_inner + d_xb)

    # packed small-vector slab (8, d_inner): dt_b, conv_b, D, conv_w rows, pad
    vec = jnp.zeros((8, D_INNER), f32)
    vec = vec.at[0, :].set(p["dt_proj_b"].astype(f32))
    vec = vec.at[1, :].set(p["conv_b"].astype(f32))
    vec = vec.at[2, :].set(p["d_param"].astype(f32))
    vec = vec.at[3:3 + D_CONV, :].set(p["conv_w"][:, 0, :].astype(f32).T)

    # packed matrix slab: [-exp(A_log)^T ; one-hot C expander ; one-hot B expander ; pad]
    a_neg = -jnp.exp(p["a_log"].astype(f32)).T                  # (d_state, d_inner)
    sel_c = (c_idx[None, :] // D_STATE ==
             jnp.arange(NUM_C_HEAD)[:, None]).astype(f32)       # (n_c_head, d_inner)
    sel_b = (c_idx[None, :] // (D_STATE * REPEAT_GROUP) ==
             jnp.arange(NUM_XB_HEAD)[:, None]).astype(f32)      # (n_xb_head, d_inner)
    mat = jnp.concatenate(
        [a_neg, sel_c, sel_b, jnp.zeros((2, D_INNER), f32)], axis=0)   # (24, d_inner)

    # fused MLP gate|up, post-attention RMSNorm gamma folded
    w_gu = jnp.concatenate([p["gate_w"].astype(f32).T, p["up_w"].astype(f32).T], axis=1)
    w_gu = ln2[:, None] * w_gu                                  # (d_model, 2*inter)

    return {
        "w_in": w_in.astype(bf16),
        "vec": vec,                                             # f32
        "mat": mat,                                             # f32
        "w_out": p["out_proj_w"].astype(f32).T.astype(bf16),    # (d_inner, d_model)
        "w_gu": w_gu.astype(bf16),
        "w_dn": p["down_w"].astype(f32).T.astype(bf16),         # (inter, d_model)
    }


# ---------------- full decoder-layer forward (single un-gridded pallas_call) ----------------
def mamba_decoder_layer(hidden_states, kp):
    B, L, D = hidden_states.shape
    x2 = hidden_states.reshape(B * L, D)

    kern = functools.partial(
        _fused_layer_kernel, eps=RMS_EPS, batch=B, seqlen=L, d_state=D_STATE,
        n_xb_head=NUM_XB_HEAD, n_c_head=NUM_C_HEAD, d_conv=D_CONV)

    vmem = pl.BlockSpec(memory_space=pltpu.MemorySpace.VMEM)
    out2 = pl.pallas_call(
        kern,
        out_shape=jax.ShapeDtypeStruct((B * L, D), hidden_states.dtype),
        in_specs=[vmem] * 7,
        out_specs=vmem,
    )(x2, kp["w_in"], kp["vec"], kp["mat"], kp["w_out"], kp["w_gu"], kp["w_dn"])

    # inference_params is None in this synthetic path -> (hidden_states, None, None)
    return out2.reshape(B, L, D), None, None


if __name__ == "__main__":
    root = jax.random.PRNGKey(0)
    k_params, k_x = jax.random.split(root)
    params = prepare_params(init_params(k_params))
    hidden_states = jax.random.normal(k_x, (BATCH, SEQLEN, D_MODEL), jnp.float32)

    out, _, _ = mamba_decoder_layer(hidden_states, params)
    out = jax.block_until_ready(out)

    assert out.shape == (BATCH, SEQLEN, D_MODEL)
    assert bool(jnp.all(jnp.isfinite(out)))
    print("KERNEL_OK")
</pallas_src>

<mosaic_0001>
module attributes {stable_mosaic.version = 11 : i64} {
  func.func @_fused_layer_kernel(%arg0: memref<16x32xf32, #tpu.memory_space<vmem>>, %arg1: memref<32x288xbf16, #tpu.memory_space<vmem>>, %arg2: memref<8x64xf32, #tpu.memory_space<vmem>>, %arg3: memref<24x64xf32, #tpu.memory_space<vmem>>, %arg4: memref<64x32xbf16, #tpu.memory_space<vmem>>, %arg5: memref<32x128xbf16, #tpu.memory_space<vmem>>, %arg6: memref<64x32xbf16, #tpu.memory_space<vmem>>, %arg7: memref<16x32xf32, #tpu.memory_space<vmem>>) attributes {dimension_semantics = [], scalar_prefetch = 0 : i64, scratch_operands = 0 : i64, tpu.core_type = #tpu.core_type<tc>} {
    %c0 = arith.constant 0 : index
    %c0_0 = arith.constant 0 : index
    %0 = vector.load %arg0[%c0, %c0_0] : memref<16x32xf32, #tpu.memory_space<vmem>>, vector<16x32xf32>
    %c0_1 = arith.constant 0 : index
    %c0_2 = arith.constant 0 : index
    %1 = vector.load %arg2[%c0_1, %c0_2] : memref<8x64xf32, #tpu.memory_space<vmem>>, vector<1x64xf32>
    %c1 = arith.constant 1 : index
    %c0_3 = arith.constant 0 : index
    %2 = vector.load %arg2[%c1, %c0_3] : memref<8x64xf32, #tpu.memory_space<vmem>>, vector<1x64xf32>
    %c2 = arith.constant 2 : index
    %c0_4 = arith.constant 0 : index
    %3 = vector.load %arg2[%c2, %c0_4] : memref<8x64xf32, #tpu.memory_space<vmem>>, vector<1x64xf32>
    %c3 = arith.constant 3 : index
    %c0_5 = arith.constant 0 : index
    %4 = vector.load %arg2[%c3, %c0_5] : memref<8x64xf32, #tpu.memory_space<vmem>>, vector<4x64xf32>
    %c0_6 = arith.constant 0 : index
    %c0_7 = arith.constant 0 : index
    %5 = vector.load %arg3[%c0_6, %c0_7] : memref<24x64xf32, #tpu.memory_space<vmem>>, vector<16x64xf32>
    %c16 = arith.constant 16 : index
    %c0_8 = arith.constant 0 : index
    %6 = vector.load %arg3[%c16, %c0_8] : memref<24x64xf32, #tpu.memory_space<vmem>>, vector<4x64xf32>
    %c20 = arith.constant 20 : index
    %c0_9 = arith.constant 0 : index
    %7 = vector.load %arg3[%c20, %c0_9] : memref<24x64xf32, #tpu.memory_space<vmem>>, vector<2x64xf32>
    %8 = arith.mulf %0, %0 : vector<16x32xf32>
    %cst = arith.constant dense<0.000000e+00> : vector<16xf32>
    %9 = vector.multi_reduction <add>, %8, %cst [1] : vector<16x32xf32> to vector<16xf32>
    %10 = vector.shape_cast %9 : vector<16xf32> to vector<16x1xf32>
    %cst_10 = arith.constant 3.200000e+01 : f32
    %11 = vector.broadcast %cst_10 : f32 to vector<16x1xf32>
    %12 = arith.divf %10, %11 : vector<16x1xf32>
    %cst_11 = arith.constant 9.99999974E-6 : f32
    %13 = vector.broadcast %cst_11 : f32 to vector<16x1xf32>
    %14 = arith.addf %12, %13 : vector<16x1xf32>
    %15 = math.rsqrt %14 : vector<16x1xf32>
    %16 = vector.broadcast %15 : vector<16x1xf32> to vector<16x32xf32>
    %17 = arith.mulf %0, %16 : vector<16x32xf32>
    %18 = arith.truncf %17 : vector<16x32xf32> to vector<16x32xbf16>
    %c0_12 = arith.constant 0 : index
    %c0_13 = arith.constant 0 : index
    %19 = vector.load %arg1[%c0_12, %c0_13] : memref<32x288xbf16, #tpu.memory_space<vmem>>, vector<32x288xbf16>
    %cst_14 = arith.constant dense<0.000000e+00> : vector<16x288xf32>
    %20 = tpu.matmul %18, %19, %cst_14 {dimension_numbers = #tpu.dot_dimension_numbers<[1], [0], [0], [1], [0, 0, 1, 1], [], []>} : vector<16x32xbf16>, vector<32x288xbf16>, vector<16x288xf32> -> vector<16x288xf32>
    %21 = vector.extract_strided_slice %20 {offsets = [0, 0], sizes = [16, 64], strides = [1, 1]} : vector<16x288xf32> to vector<16x64xf32>
    %22 = vector.extract_strided_slice %20 {offsets = [0, 64], sizes = [16, 64], strides = [1, 1]} : vector<16x288xf32> to vector<16x64xf32>
    %23 = vector.extract_strided_slice %20 {offsets = [0, 128], sizes = [16, 64], strides = [1, 1]} : vector<16x288xf32> to vector<16x64xf32>
    %24 = vector.extract_strided_slice %20 {offsets = [0, 192], sizes = [16, 64], strides = [1, 1]} : vector<16x288xf32> to vector<16x64xf32>
    %25 = vector.broadcast %1 : vector<1x64xf32> to vector<16x64xf32>
    %26 = arith.addf %24, %25 : vector<16x64xf32>
    %27 = vector.extract_strided_slice %20 {offsets = [0, 256], sizes = [16, 32], strides = [1, 1]} : vector<16x288xf32> to vector<16x32xf32>
    %28 = tpu.iota {dimensions = array<i32: 0>} : vector<16x1xi32>
    %c8_i32 = arith.constant 8 : i32
    %c0_i32 = arith.constant 0 : i32
    %29 = arith.cmpi eq, %c8_i32, %c0_i32 : i32
    %c1_i32 = arith.constant 1 : i32
    %30 = arith.select %29, %c1_i32, %c8_i32 : i32
    %31 = vector.broadcast %30 : i32 to vector<16x1xi32>
    %32 = arith.remsi %28, %31 : vector<16x1xi32>
    %c0_i32_15 = arith.constant 0 : i32
    %33 = vector.broadcast %c0_i32_15 : i32 to vector<16x1xi32>
    %34 = arith.cmpi ne, %32, %33 : vector<16x1xi32>
    %c0_i32_16 = arith.constant 0 : i32
    %35 = vector.broadcast %c0_i32_16 : i32 to vector<16x1xi32>
    %36 = arith.cmpi slt, %32, %35 : vector<16x1xi32>
    %c0_i32_17 = arith.constant 0 : i32
    %37 = arith.cmpi slt, %30, %c0_i32_17 : i32
    %38 = vector.broadcast %37 : i1 to vector<16x1xi1>
    %39 = vector.broadcast %38 : vector<16x1xi1> to vector<16x1xi1>
    %40 = arith.xori %36, %39 : vector<16x1xi1>
    %41 = arith.andi %40, %34 : vector<16x1xi1>
    %42 = vector.broadcast %30 : i32 to vector<16x1xi32>
    %43 = arith.addi %32, %42 : vector<16x1xi32>
    %44 = arith.select %41, %43, %32 : vector<16x1xi1>, vector<16x1xi32>
    %45 = vector.extract_strided_slice %4 {offsets = [3, 0], sizes = [1, 64], strides = [1, 1]} : vector<4x64xf32> to vector<1x64xf32>
    %46 = vector.broadcast %45 : vector<1x64xf32> to vector<16x64xf32>
    %47 = arith.mulf %22, %46 : vector<16x64xf32>
    %48 = vector.broadcast %2 : vector<1x64xf32> to vector<16x64xf32>
    %49 = arith.addf %47, %48 : vector<16x64xf32>
    %cst_18 = arith.constant 0.000000e+00 : f32
    %50 = vector.broadcast %cst_18 : f32 to vector<1x64xf32>
    %51 = vector.extract_strided_slice %22 {offsets = [0, 0], sizes = [15, 64], strides = [1, 1]} : vector<16x64xf32> to vector<15x64xf32>
    %52 = tpu.concatenate %50, %51 in 0 : vector<1x64xf32>, vector<15x64xf32> -> vector<16x64xf32>
    %c1_i32_19 = arith.constant 1 : i32
    %53 = vector.broadcast %c1_i32_19 : i32 to vector<16x1xi32>
    %54 = arith.cmpi sge, %44, %53 : vector<16x1xi32>
    %cst_20 = arith.constant 0.000000e+00 : f32
    %55 = vector.shape_cast %54 : vector<16x1xi1> to vector<16x1xi1>
    %56 = vector.broadcast %55 : vector<16x1xi1> to vector<16x64xi1>
    %57 = vector.broadcast %cst_20 : f32 to vector<16x64xf32>
    %58 = arith.select %56, %52, %57 : vector<16x64xi1>, vector<16x64xf32>
    %59 = vector.extract_strided_slice %4 {offsets = [2, 0], sizes = [1, 64], strides = [1, 1]} : vector<4x64xf32> to vector<1x64xf32>
    %60 = vector.broadcast %59 : vector<1x64xf32> to vector<16x64xf32>
    %61 = arith.mulf %58, %60 : vector<16x64xf32>
    %62 = arith.addf %49, %61 : vector<16x64xf32>
    %cst_21 = arith.constant 0.000000e+00 : f32
    %63 = vector.broadcast %cst_21 : f32 to vector<2x64xf32>
    %64 = vector.extract_strided_slice %22 {offsets = [0, 0], sizes = [14, 64], strides = [1, 1]} : vector<16x64xf32> to vector<14x64xf32>
    %65 = tpu.concatenate %63, %64 in 0 : vector<2x64xf32>, vector<14x64xf32> -> vector<16x64xf32>
    %c2_i32 = arith.constant 2 : i32
    %66 = vector.broadcast %c2_i32 : i32 to vector<16x1xi32>
    %67 = arith.cmpi sge, %44, %66 : vector<16x1xi32>
    %cst_22 = arith.constant 0.000000e+00 : f32
    %68 = vector.shape_cast %67 : vector<16x1xi1> to vector<16x1xi1>
    %69 = vector.broadcast %68 : vector<16x1xi1> to vector<16x64xi1>
    %70 = vector.broadcast %cst_22 : f32 to vector<16x64xf32>
    %71 = arith.select %69, %65, %70 : vector<16x64xi1>, vector<16x64xf32>
    %72 = vector.extract_strided_slice %4 {offsets = [1, 0], sizes = [1, 64], strides = [1, 1]} : vector<4x64xf32> to vector<1x64xf32>
    %73 = vector.broadcast %72 : vector<1x64xf32> to vector<16x64xf32>
    %74 = arith.mulf %71, %73 : vector<16x64xf32>
    %75 = arith.addf %62, %74 : vector<16x64xf32>
    %cst_23 = arith.constant 0.000000e+00 : f32
    %76 = vector.broadcast %cst_23 : f32 to vector<3x64xf32>
    %77 = vector.extract_strided_slice %22 {offsets = [0, 0], sizes = [13, 64], strides = [1, 1]} : vector<16x64xf32> to vector<13x64xf32>
    %78 = tpu.concatenate %76, %77 in 0 : vector<3x64xf32>, vector<13x64xf32> -> vector<16x64xf32>
    %c3_i32 = arith.constant 3 : i32
    %79 = vector.broadcast %c3_i32 : i32 to vector<16x1xi32>
    %80 = arith.cmpi sge, %44, %79 : vector<16x1xi32>
    %cst_24 = arith.constant 0.000000e+00 : f32
    %81 = vector.shape_cast %80 : vector<16x1xi1> to vector<16x1xi1>
    %82 = vector.broadcast %81 : vector<16x1xi1> to vector<16x64xi1>
    %83 = vector.broadcast %cst_24 : f32 to vector<16x64xf32>
    %84 = arith.select %82, %78, %83 : vector<16x64xi1>, vector<16x64xf32>
    %85 = vector.extract_strided_slice %4 {offsets = [0, 0], sizes = [1, 64], strides = [1, 1]} : vector<4x64xf32> to vector<1x64xf32>
    %86 = vector.broadcast %85 : vector<1x64xf32> to vector<16x64xf32>
    %87 = arith.mulf %84, %86 : vector<16x64xf32>
    %88 = arith.addf %75, %87 : vector<16x64xf32>
    %cst_25 = arith.constant 5.000000e-01 : f32
    %89 = vector.broadcast %cst_25 : f32 to vector<16x64xf32>
    %90 = arith.mulf %89, %88 : vector<16x64xf32>
    %91 = math.tanh %90 : vector<16x64xf32>
    %cst_26 = arith.constant 1.000000e+00 : f32
    %92 = vector.broadcast %cst_26 : f32 to vector<16x64xf32>
    %93 = arith.addf %91, %92 : vector<16x64xf32>
    %cst_27 = arith.constant 5.000000e-01 : f32
    %94 = vector.broadcast %cst_27 : f32 to vector<16x64xf32>
    %95 = arith.mulf %94, %93 : vector<16x64xf32>
    %96 = arith.mulf %88, %95 : vector<16x64xf32>
    %cst_28 = arith.constant 2.000000e+01 : f32
    %97 = vector.broadcast %cst_28 : f32 to vector<16x64xf32>
    %98 = arith.minimumf %26, %97 : vector<16x64xf32>
    %cst_29 = arith.constant 2.000000e+01 : f32
    %99 = vector.broadcast %cst_29 : f32 to vector<16x64xf32>
    %100 = arith.cmpf ogt, %26, %99 : vector<16x64xf32>
    %101 = math.exp %98 : vector<16x64xf32>
    %cst_30 = arith.constant 1.000000e+00 : f32
    %102 = vector.broadcast %cst_30 : f32 to vector<16x64xf32>
    %103 = arith.addf %102, %101 : vector<16x64xf32>
    %104 = math.log %103 : vector<16x64xf32>
    %105 = arith.select %100, %26, %104 : vector<16x64xi1>, vector<16x64xf32>
    %106 = arith.mulf %105, %96 : vector<16x64xf32>
    %cst_31 = arith.constant 5.000000e-01 : f32
    %107 = vector.broadcast %cst_31 : f32 to vector<16x64xf32>
    %108 = arith.mulf %107, %21 : vector<16x64xf32>
    %109 = math.tanh %108 : vector<16x64xf32>
    %cst_32 = arith.constant 1.000000e+00 : f32
    %110 = vector.broadcast %cst_32 : f32 to vector<16x64xf32>
    %111 = arith.addf %109, %110 : vector<16x64xf32>
    %cst_33 = arith.constant 5.000000e-01 : f32
    %112 = vector.broadcast %cst_33 : f32 to vector<16x64xf32>
    %113 = arith.mulf %112, %111 : vector<16x64xf32>
    %114 = arith.mulf %21, %113 : vector<16x64xf32>
    %115 = vector.shape_cast %105 : vector<16x64xf32> to vector<16x1x64xf32>
    %116 = vector.shape_cast %5 : vector<16x64xf32> to vector<1x16x64xf32>
    %117 = vector.broadcast %115 : vector<16x1x64xf32> to vector<16x16x64xf32>
    %118 = vector.broadcast %116 : vector<1x16x64xf32> to vector<16x16x64xf32>
    %119 = arith.mulf %117, %118 : vector<16x16x64xf32>
    %120 = math.exp %119 : vector<16x16x64xf32>
    %121 = vector.shape_cast %23 : vector<16x64xf32> to vector<16x4x16xf32>
    %122 = tpu.transpose %121, [0, 2, 1] : vector<16x4x16xf32> -> vector<16x16x4xf32>
    %123 = vector.shape_cast %122 : vector<16x16x4xf32> to vector<256x4xf32>
    %cst_34 = arith.constant dense<0.000000e+00> : vector<256x64xf32>
    %124 = tpu.matmul %123, %6, %cst_34 {dimension_numbers = #tpu.dot_dimension_numbers<[1], [0], [0], [1], [0, 0, 1, 1], [], []>} : vector<256x4xf32>, vector<4x64xf32>, vector<256x64xf32> -> vector<256x64xf32>
    %125 = vector.shape_cast %124 : vector<256x64xf32> to vector<16x16x64xf32>
    %126 = vector.shape_cast %27 : vector<16x32xf32> to vector<16x2x16xf32>
    %127 = tpu.transpose %126, [0, 2, 1] : vector<16x2x16xf32> -> vector<16x16x2xf32>
    %128 = vector.shape_cast %127 : vector<16x16x2xf32> to vector<256x2xf32>
    %cst_35 = arith.constant dense<0.000000e+00> : vector<256x64xf32>
    %129 = tpu.matmul %128, %7, %cst_35 {dimension_numbers = #tpu.dot_dimension_numbers<[1], [0], [0], [1], [0, 0, 1, 1], [], []>} : vector<256x2xf32>, vector<2x64xf32>, vector<256x64xf32> -> vector<256x64xf32>
    %130 = vector.shape_cast %129 : vector<256x64xf32> to vector<16x16x64xf32>
    %131 = vector.shape_cast %106 : vector<16x64xf32> to vector<16x1x64xf32>
    %132 = vector.broadcast %131 : vector<16x1x64xf32> to vector<16x16x64xf32>
    %133 = arith.mulf %130, %132 : vector<16x16x64xf32>
    %cst_36 = arith.constant 0.000000e+00 : f32
    %134 = vector.broadcast %cst_36 : f32 to vector<16x64xf32>
    %135 = vector.extract_strided_slice %120 {offsets = [0, 0, 0], sizes = [1, 16, 64], strides = [1, 1, 1]} : vector<16x16x64xf32> to vector<1x16x64xf32>
    %136 = vector.shape_cast %135 : vector<1x16x64xf32> to vector<16x64xf32>
    %137 = arith.mulf %136, %134 : vector<16x64xf32>
    %138 = vector.extract_strided_slice %133 {offsets = [0, 0, 0], sizes = [1, 16, 64], strides = [1, 1, 1]} : vector<16x16x64xf32> to vector<1x16x64xf32>
    %139 = vector.shape_cast %138 : vector<1x16x64xf32> to vector<16x64xf32>
    %140 = arith.addf %137, %139 : vector<16x64xf32>
    %141 = vector.extract_strided_slice %125 {offsets = [0, 0, 0], sizes = [1, 16, 64], strides = [1, 1, 1]} : vector<16x16x64xf32> to vector<1x16x64xf32>
    %142 = vector.shape_cast %141 : vector<1x16x64xf32> to vector<16x64xf32>
    %143 = arith.mulf %142, %140 : vector<16x64xf32>
    %cst_37 = arith.constant dense<0.000000e+00> : vector<64xf32>
    %144 = vector.multi_reduction <add>, %143, %cst_37 [0] : vector<16x64xf32> to vector<64xf32>
    %145 = vector.shape_cast %144 : vector<64xf32> to vector<1x64xf32>
    %146 = vector.extract_strided_slice %120 {offsets = [1, 0, 0], sizes = [1, 16, 64], strides = [1, 1, 1]} : vector<16x16x64xf32> to vector<1x16x64xf32>
    %147 = vector.shape_cast %146 : vector<1x16x64xf32> to vector<16x64xf32>
    %148 = arith.mulf %147, %140 : vector<16x64xf32>
    %149 = vector.extract_strided_slice %133 {offsets = [1, 0, 0], sizes = [1, 16, 64], strides = [1, 1, 1]} : vector<16x16x64xf32> to vector<1x16x64xf32>
    %150 = vector.shape_cast %149 : vector<1x16x64xf32> to vector<16x64xf32>
    %151 = arith.addf %148, %150 : vector<16x64xf32>
    %152 = vector.extract_strided_slice %125 {offsets = [1, 0, 0], sizes = [1, 16, 64], strides = [1, 1, 1]} : vector<16x16x64xf32> to vector<1x16x64xf32>
    %153 = vector.shape_cast %152 : vector<1x16x64xf32> to vector<16x64xf32>
    %154 = arith.mulf %153, %151 : vector<16x64xf32>
    %cst_38 = arith.constant dense<0.000000e+00> : vector<64xf32>
    %155 = vector.multi_reduction <add>, %154, %cst_38 [0] : vector<16x64xf32> to vector<64xf32>
    %156 = vector.shape_cast %155 : vector<64xf32> to vector<1x64xf32>
    %157 = vector.extract_strided_slice %120 {offsets = [2, 0, 0], sizes = [1, 16, 64], strides = [1, 1, 1]} : vector<16x16x64xf32> to vector<1x16x64xf32>
    %158 = vector.shape_cast %157 : vector<1x16x64xf32> to vector<16x64xf32>
    %159 = arith.mulf %158, %151 : vector<16x64xf32>
    %160 = vector.extract_strided_slice %133 {offsets = [2, 0, 0], sizes = [1, 16, 64], strides = [1, 1, 1]} : vector<16x16x64xf32> to vector<1x16x64xf32>
    %161 = vector.shape_cast %160 : vector<1x16x64xf32> to vector<16x64xf32>
    %162 = arith.addf %159, %161 : vector<16x64xf32>
    %163 = vector.extract_strided_slice %125 {offsets = [2, 0, 0], sizes = [1, 16, 64], strides = [1, 1, 1]} : vector<16x16x64xf32> to vector<1x16x64xf32>
    %164 = vector.shape_cast %163 : vector<1x16x64xf32> to vector<16x64xf32>
    %165 = arith.mulf %164, %162 : vector<16x64xf32>
    %cst_39 = arith.constant dense<0.000000e+00> : vector<64xf32>
    %166 = vector.multi_reduction <add>, %165, %cst_39 [0] : vector<16x64xf32> to vector<64xf32>
    %167 = vector.shape_cast %166 : vector<64xf32> to vector<1x64xf32>
    %168 = vector.extract_strided_slice %120 {offsets = [3, 0, 0], sizes = [1, 16, 64], strides = [1, 1, 1]} : vector<16x16x64xf32> to vector<1x16x64xf32>
    %169 = vector.shape_cast %168 : vector<1x16x64xf32> to vector<16x64xf32>
    %170 = arith.mulf %169, %162 : vector<16x64xf32>
    %171 = vector.extract_strided_slice %133 {offsets = [3, 0, 0], sizes = [1, 16, 64], strides = [1, 1, 1]} : vector<16x16x64xf32> to vector<1x16x64xf32>
    %172 = vector.shape_cast %171 : vector<1x16x64xf32> to vector<16x64xf32>
    %173 = arith.addf %170, %172 : vector<16x64xf32>
    %174 = vector.extract_strided_slice %125 {offsets = [3, 0, 0], sizes = [1, 16, 64], strides = [1, 1, 1]} : vector<16x16x64xf32> to vector<1x16x64xf32>
    %175 = vector.shape_cast %174 : vector<1x16x64xf32> to vector<16x64xf32>
    %176 = arith.mulf %175, %173 : vector<16x64xf32>
    %cst_40 = arith.constant dense<0.000000e+00> : vector<64xf32>
    %177 = vector.multi_reduction <add>, %176, %cst_40 [0] : vector<16x64xf32> to vector<64xf32>
    %178 = vector.shape_cast %177 : vector<64xf32> to vector<1x64xf32>
    %179 = vector.extract_strided_slice %120 {offsets = [4, 0, 0], sizes = [1, 16, 64], strides = [1, 1, 1]} : vector<16x16x64xf32> to vector<1x16x64xf32>
    %180 = vector.shape_cast %179 : vector<1x16x64xf32> to vector<16x64xf32>
    %181 = arith.mulf %180, %173 : vector<16x64xf32>
    %182 = vector.extract_strided_slice %133 {offsets = [4, 0, 0], sizes = [1, 16, 64], strides = [1, 1, 1]} : vector<16x16x64xf32> to vector<1x16x64xf32>
    %183 = vector.shape_cast %182 : vector<1x16x64xf32> to vector<16x64xf32>
    %184 = arith.addf %181, %183 : vector<16x64xf32>
    %185 = vector.extract_strided_slice %125 {offsets = [4, 0, 0], sizes = [1, 16, 64], strides = [1, 1, 1]} : vector<16x16x64xf32> to vector<1x16x64xf32>
    %186 = vector.shape_cast %185 : vector<1x16x64xf32> to vector<16x64xf32>
    %187 = arith.mulf %186, %184 : vector<16x64xf32>
    %cst_41 = arith.constant dense<0.000000e+00> : vector<64xf32>
    %188 = vector.multi_reduction <add>, %187, %cst_41 [0] : vector<16x64xf32> to vector<64xf32>
    %189 = vector.shape_cast %188 : vector<64xf32> to vector<1x64xf32>
    %190 = vector.extract_strided_slice %120 {offsets = [5, 0, 0], sizes = [1, 16, 64], strides = [1, 1, 1]} : vector<16x16x64xf32> to vector<1x16x64xf32>
    %191 = vector.shape_cast %190 : vector<1x16x64xf32> to vector<16x64xf32>
    %192 = arith.mulf %191, %184 : vector<16x64xf32>
    %193 = vector.extract_strided_slice %133 {offsets = [5, 0, 0], sizes = [1, 16, 64], strides = [1, 1, 1]} : vector<16x16x64xf32> to vector<1x16x64xf32>
    %194 = vector.shape_cast %193 : vector<1x16x64xf32> to vector<16x64xf32>
    %195 = arith.addf %192, %194 : vector<16x64xf32>
    %196 = vector.extract_strided_slice %125 {offsets = [5, 0, 0], sizes = [1, 16, 64], strides = [1, 1, 1]} : vector<16x16x64xf32> to vector<1x16x64xf32>
    %197 = vector.shape_cast %196 : vector<1x16x64xf32> to vector<16x64xf32>
    %198 = arith.mulf %197, %195 : vector<16x64xf32>
    %cst_42 = arith.constant dense<0.000000e+00> : vector<64xf32>
    %199 = vector.multi_reduction <add>, %198, %cst_42 [0] : vector<16x64xf32> to vector<64xf32>
    %200 = vector.shape_cast %199 : vector<64xf32> to vector<1x64xf32>
    %201 = vector.extract_strided_slice %120 {offsets = [6, 0, 0], sizes = [1, 16, 64], strides = [1, 1, 1]} : vector<16x16x64xf32> to vector<1x16x64xf32>
    %202 = vector.shape_cast %201 : vector<1x16x64xf32> to vector<16x64xf32>
    %203 = arith.mulf %202, %195 : vector<16x64xf32>
    %204 = vector.extract_strided_slice %133 {offsets = [6, 0, 0], sizes = [1, 16, 64], strides = [1, 1, 1]} : vector<16x16x64xf32> to vector<1x16x64xf32>
    %205 = vector.shape_cast %204 : vector<1x16x64xf32> to vector<16x64xf32>
    %206 = arith.addf %203, %205 : vector<16x64xf32>
    %207 = vector.extract_strided_slice %125 {offsets = [6, 0, 0], sizes = [1, 16, 64], strides = [1, 1, 1]} : vector<16x16x64xf32> to vector<1x16x64xf32>
    %208 = vector.shape_cast %207 : vector<1x16x64xf32> to vector<16x64xf32>
    %209 = arith.mulf %208, %206 : vector<16x64xf32>
    %cst_43 = arith.constant dense<0.000000e+00> : vector<64xf32>
    %210 = vector.multi_reduction <add>, %209, %cst_43 [0] : vector<16x64xf32> to vector<64xf32>
    %211 = vector.shape_cast %210 : vector<64xf32> to vector<1x64xf32>
    %212 = vector.extract_strided_slice %120 {offsets = [7, 0, 0], sizes = [1, 16, 64], strides = [1, 1, 1]} : vector<16x16x64xf32> to vector<1x16x64xf32>
    %213 = vector.shape_cast %212 : vector<1x16x64xf32> to vector<16x64xf32>
    %214 = arith.mulf %213, %206 : vector<16x64xf32>
    %215 = vector.extract_strided_slice %133 {offsets = [7, 0, 0], sizes = [1, 16, 64], strides = [1, 1, 1]} : vector<16x16x64xf32> to vector<1x16x64xf32>
    %216 = vector.shape_cast %215 : vector<1x16x64xf32> to vector<16x64xf32>
    %217 = arith.addf %214, %216 : vector<16x64xf32>
    %218 = vector.extract_strided_slice %125 {offsets = [7, 0, 0], sizes = [1, 16, 64], strides = [1, 1, 1]} : vector<16x16x64xf32> to vector<1x16x64xf32>
    %219 = vector.shape_cast %218 : vector<1x16x64xf32> to vector<16x64xf32>
    %220 = arith.mulf %219, %217 : vector<16x64xf32>
    %cst_44 = arith.constant dense<0.000000e+00> : vector<64xf32>
    %221 = vector.multi_reduction <add>, %220, %cst_44 [0] : vector<16x64xf32> to vector<64xf32>
    %222 = vector.shape_cast %221 : vector<64xf32> to vector<1x64xf32>
    %cst_45 = arith.constant 0.000000e+00 : f32
    %223 = vector.broadcast %cst_45 : f32 to vector<16x64xf32>
    %224 = vector.extract_strided_slice %120 {offsets = [8, 0, 0], sizes = [1, 16, 64], strides = [1, 1, 1]} : vector<16x16x64xf32> to vector<1x16x64xf32>
    %225 = vector.shape_cast %224 : vector<1x16x64xf32> to vector<16x64xf32>
    %226 = arith.mulf %225, %223 : vector<16x64xf32>
    %227 = vector.extract_strided_slice %133 {offsets = [8, 0, 0], sizes = [1, 16, 64], strides = [1, 1, 1]} : vector<16x16x64xf32> to vector<1x16x64xf32>
    %228 = vector.shape_cast %227 : vector<1x16x64xf32> to vector<16x64xf32>
    %229 = arith.addf %226, %228 : vector<16x64xf32>
    %230 = vector.extract_strided_slice %125 {offsets = [8, 0, 0], sizes = [1, 16, 64], strides = [1, 1, 1]} : vector<16x16x64xf32> to vector<1x16x64xf32>
    %231 = vector.shape_cast %230 : vector<1x16x64xf32> to vector<16x64xf32>
    %232 = arith.mulf %231, %229 : vector<16x64xf32>
    %cst_46 = arith.constant dense<0.000000e+00> : vector<64xf32>
    %233 = vector.multi_reduction <add>, %232, %cst_46 [0] : vector<16x64xf32> to vector<64xf32>
    %234 = vector.shape_cast %233 : vector<64xf32> to vector<1x64xf32>
    %235 = vector.extract_strided_slice %120 {offsets = [9, 0, 0], sizes = [1, 16, 64], strides = [1, 1, 1]} : vector<16x16x64xf32> to vector<1x16x64xf32>
    %236 = vector.shape_cast %235 : vector<1x16x64xf32> to vector<16x64xf32>
    %237 = arith.mulf %236, %229 : vector<16x64xf32>
    %238 = vector.extract_strided_slice %133 {offsets = [9, 0, 0], sizes = [1, 16, 64], strides = [1, 1, 1]} : vector<16x16x64xf32> to vector<1x16x64xf32>
    %239 = vector.shape_cast %238 : vector<1x16x64xf32> to vector<16x64xf32>
    %240 = arith.addf %237, %239 : vector<16x64xf32>
    %241 = vector.extract_strided_slice %125 {offsets = [9, 0, 0], sizes = [1, 16, 64], strides = [1, 1, 1]} : vector<16x16x64xf32> to vector<1x16x64xf32>
    %242 = vector.shape_cast %241 : vector<1x16x64xf32> to vector<16x64xf32>
    %243 = arith.mulf %242, %240 : vector<16x64xf32>
    %cst_47 = arith.constant dense<0.000000e+00> : vector<64xf32>
    %244 = vector.multi_reduction <add>, %243, %cst_47 [0] : vector<16x64xf32> to vector<64xf32>
    %245 = vector.shape_cast %244 : vector<64xf32> to vector<1x64xf32>
    %246 = vector.extract_strided_slice %120 {offsets = [10, 0, 0], sizes = [1, 16, 64], strides = [1, 1, 1]} : vector<16x16x64xf32> to vector<1x16x64xf32>
    %247 = vector.shape_cast %246 : vector<1x16x64xf32> to vector<16x64xf32>
    %248 = arith.mulf %247, %240 : vector<16x64xf32>
    %249 = vector.extract_strided_slice %133 {offsets = [10, 0, 0], sizes = [1, 16, 64], strides = [1, 1, 1]} : vector<16x16x64xf32> to vector<1x16x64xf32>
    %250 = vector.shape_cast %249 : vector<1x16x64xf32> to vector<16x64xf32>
    %251 = arith.addf %248, %250 : vector<16x64xf32>
    %252 = vector.extract_strided_slice %125 {offsets = [10, 0, 0], sizes = [1, 16, 64], strides = [1, 1, 1]} : vector<16x16x64xf32> to vector<1x16x64xf32>
    %253 = vector.shape_cast %252 : vector<1x16x64xf32> to vector<16x64xf32>
    %254 = arith.mulf %253, %251 : vector<16x64xf32>
    %cst_48 = arith.constant dense<0.000000e+00> : vector<64xf32>
    %255 = vector.multi_reduction <add>, %254, %cst_48 [0] : vector<16x64xf32> to vector<64xf32>
    %256 = vector.shape_cast %255 : vector<64xf32> to vector<1x64xf32>
    %257 = vector.extract_strided_slice %120 {offsets = [11, 0, 0], sizes = [1, 16, 64], strides = [1, 1, 1]} : vector<16x16x64xf32> to vector<1x16x64xf32>
    %258 = vector.shape_cast %257 : vector<1x16x64xf32> to vector<16x64xf32>
    %259 = arith.mulf %258, %251 : vector<16x64xf32>
    %260 = vector.extract_strided_slice %133 {offsets = [11, 0, 0], sizes = [1, 16, 64], strides = [1, 1, 1]} : vector<16x16x64xf32> to vector<1x16x64xf32>
    %261 = vector.shape_cast %260 : vector<1x16x64xf32> to vector<16x64xf32>
    %262 = arith.addf %259, %261 : vector<16x64xf32>
    %263 = vector.extract_strided_slice %125 {offsets = [11, 0, 0], sizes = [1, 16, 64], strides = [1, 1, 1]} : vector<16x16x64xf32> to vector<1x16x64xf32>
    %264 = vector.shape_cast %263 : vector<1x16x64xf32> to vector<16x64xf32>
    %265 = arith.mulf %264, %262 : vector<16x64xf32>
    %cst_49 = arith.constant dense<0.000000e+00> : vector<64xf32>
    %266 = vector.multi_reduction <add>, %265, %cst_49 [0] : vector<16x64xf32> to vector<64xf32>
    %267 = vector.shape_cast %266 : vector<64xf32> to vector<1x64xf32>
    %268 = vector.extract_strided_slice %120 {offsets = [12, 0, 0], sizes = [1, 16, 64], strides = [1, 1, 1]} : vector<16x16x64xf32> to vector<1x16x64xf32>
    %269 = vector.shape_cast %268 : vector<1x16x64xf32> to vector<16x64xf32>
    %270 = arith.mulf %269, %262 : vector<16x64xf32>
    %271 = vector.extract_strided_slice %133 {offsets = [12, 0, 0], sizes = [1, 16, 64], strides = [1, 1, 1]} : vector<16x16x64xf32> to vector<1x16x64xf32>
    %272 = vector.shape_cast %271 : vector<1x16x64xf32> to vector<16x64xf32>
    %273 = arith.addf %270, %272 : vector<16x64xf32>
    %274 = vector.extract_strided_slice %125 {offsets = [12, 0, 0], sizes = [1, 16, 64], strides = [1, 1, 1]} : vector<16x16x64xf32> to vector<1x16x64xf32>
    %275 = vector.shape_cast %274 : vector<1x16x64xf32> to vector<16x64xf32>
    %276 = arith.mulf %275, %273 : vector<16x64xf32>
    %cst_50 = arith.constant dense<0.000000e+00> : vector<64xf32>
    %277 = vector.multi_reduction <add>, %276, %cst_50 [0] : vector<16x64xf32> to vector<64xf32>
    %278 = vector.shape_cast %277 : vector<64xf32> to vector<1x64xf32>
    %279 = vector.extract_strided_slice %120 {offsets = [13, 0, 0], sizes = [1, 16, 64], strides = [1, 1, 1]} : vector<16x16x64xf32> to vector<1x16x64xf32>
    %280 = vector.shape_cast %279 : vector<1x16x64xf32> to vector<16x64xf32>
    %281 = arith.mulf %280, %273 : vector<16x64xf32>
    %282 = vector.extract_strided_slice %133 {offsets = [13, 0, 0], sizes = [1, 16, 64], strides = [1, 1, 1]} : vector<16x16x64xf32> to vector<1x16x64xf32>
    %283 = vector.shape_cast %282 : vector<1x16x64xf32> to vector<16x64xf32>
    %284 = arith.addf %281, %283 : vector<16x64xf32>
    %285 = vector.extract_strided_slice %125 {offsets = [13, 0, 0], sizes = [1, 16, 64], strides = [1, 1, 1]} : vector<16x16x64xf32> to vector<1x16x64xf32>
    %286 = vector.shape_cast %285 : vector<1x16x64xf32> to vector<16x64xf32>
    %287 = arith.mulf %286, %284 : vector<16x64xf32>
    %cst_51 = arith.constant dense<0.000000e+00> : vector<64xf32>
    %288 = vector.multi_reduction <add>, %287, %cst_51 [0] : vector<16x64xf32> to vector<64xf32>
    %289 = vector.shape_cast %288 : vector<64xf32> to vector<1x64xf32>
    %290 = vector.extract_strided_slice %120 {offsets = [14, 0, 0], sizes = [1, 16, 64], strides = [1, 1, 1]} : vector<16x16x64xf32> to vector<1x16x64xf32>
    %291 = vector.shape_cast %290 : vector<1x16x64xf32> to vector<16x64xf32>
    %292 = arith.mulf %291, %284 : vector<16x64xf32>
    %293 = vector.extract_strided_slice %133 {offsets = [14, 0, 0], sizes = [1, 16, 64], strides = [1, 1, 1]} : vector<16x16x64xf32> to vector<1x16x64xf32>
    %294 = vector.shape_cast %293 : vector<1x16x64xf32> to vector<16x64xf32>
    %295 = arith.addf %292, %294 : vector<16x64xf32>
    %296 = vector.extract_strided_slice %125 {offsets = [14, 0, 0], sizes = [1, 16, 64], strides = [1, 1, 1]} : vector<16x16x64xf32> to vector<1x16x64xf32>
    %297 = vector.shape_cast %296 : vector<1x16x64xf32> to vector<16x64xf32>
    %298 = arith.mulf %297, %295 : vector<16x64xf32>
    %cst_52 = arith.constant dense<0.000000e+00> : vector<64xf32>
    %299 = vector.multi_reduction <add>, %298, %cst_52 [0] : vector<16x64xf32> to vector<64xf32>
    %300 = vector.shape_cast %299 : vector<64xf32> to vector<1x64xf32>
    %301 = vector.extract_strided_slice %120 {offsets = [15, 0, 0], sizes = [1, 16, 64], strides = [1, 1, 1]} : vector<16x16x64xf32> to vector<1x16x64xf32>
    %302 = vector.shape_cast %301 : vector<1x16x64xf32> to vector<16x64xf32>
    %303 = arith.mulf %302, %295 : vector<16x64xf32>
    %304 = vector.extract_strided_slice %133 {offsets = [15, 0, 0], sizes = [1, 16, 64], strides = [1, 1, 1]} : vector<16x16x64xf32> to vector<1x16x64xf32>
    %305 = vector.shape_cast %304 : vector<1x16x64xf32> to vector<16x64xf32>
    %306 = arith.addf %303, %305 : vector<16x64xf32>
    %307 = vector.extract_strided_slice %125 {offsets = [15, 0, 0], sizes = [1, 16, 64], strides = [1, 1, 1]} : vector<16x16x64xf32> to vector<1x16x64xf32>
    %308 = vector.shape_cast %307 : vector<1x16x64xf32> to vector<16x64xf32>
    %309 = arith.mulf %308, %306 : vector<16x64xf32>
    %cst_53 = arith.constant dense<0.000000e+00> : vector<64xf32>
    %310 = vector.multi_reduction <add>, %309, %cst_53 [0] : vector<16x64xf32> to vector<64xf32>
    %311 = vector.shape_cast %310 : vector<64xf32> to vector<1x64xf32>
    %312 = tpu.concatenate %145, %156, %167, %178, %189, %200, %211, %222, %234, %245, %256, %267, %278, %289, %300, %311 in 0 : vector<1x64xf32>, vector<1x64xf32>, vector<1x64xf32>, vector<1x64xf32>, vector<1x64xf32>, vector<1x64xf32>, vector<1x64xf32>, vector<1x64xf32>, vector<1x64xf32>, vector<1x64xf32>, vector<1x64xf32>, vector<1x64xf32>, vector<1x64xf32>, vector<1x64xf32>, vector<1x64xf32>, vector<1x64xf32> -> vector<16x64xf32>
    %313 = vector.broadcast %3 : vector<1x64xf32> to vector<16x64xf32>
    %314 = arith.mulf %96, %313 : vector<16x64xf32>
    %315 = arith.addf %312, %314 : vector<16x64xf32>
    %316 = arith.mulf %315, %114 : vector<16x64xf32>
    %317 = arith.truncf %316 : vector<16x64xf32> to vector<16x64xbf16>
    %c0_54 = arith.constant 0 : index
    %c0_55 = arith.constant 0 : index
    %318 = vector.load %arg4[%c0_54, %c0_55] : memref<64x32xbf16, #tpu.memory_space<vmem>>, vector<64x32xbf16>
    %cst_56 = arith.constant dense<0.000000e+00> : vector<16x32xf32>
    %319 = tpu.matmul %317, %318, %cst_56 {dimension_numbers = #tpu.dot_dimension_numbers<[1], [0], [0], [1], [0, 0, 1, 1], [], []>} : vector<16x64xbf16>, vector<64x32xbf16>, vector<16x32xf32> -> vector<16x32xf32>
    %320 = arith.addf %319, %0 : vector<16x32xf32>
    %321 = arith.mulf %320, %320 : vector<16x32xf32>
    %cst_57 = arith.constant dense<0.000000e+00> : vector<16xf32>
    %322 = vector.multi_reduction <add>, %321, %cst_57 [1] : vector<16x32xf32> to vector<16xf32>
    %323 = vector.shape_cast %322 : vector<16xf32> to vector<16x1xf32>
    %cst_58 = arith.constant 3.200000e+01 : f32
    %324 = vector.broadcast %cst_58 : f32 to vector<16x1xf32>
    %325 = arith.divf %323, %324 : vector<16x1xf32>
    %cst_59 = arith.constant 9.99999974E-6 : f32
    %326 = vector.broadcast %cst_59 : f32 to vector<16x1xf32>
    %327 = arith.addf %325, %326 : vector<16x1xf32>
    %328 = math.rsqrt %327 : vector<16x1xf32>
    %329 = vector.broadcast %328 : vector<16x1xf32> to vector<16x32xf32>
    %330 = arith.mulf %320, %329 : vector<16x32xf32>
    %331 = arith.truncf %330 : vector<16x32xf32> to vector<16x32xbf16>
    %c0_60 = arith.constant 0 : index
    %c0_61 = arith.constant 0 : index
    %332 = vector.load %arg5[%c0_60, %c0_61] : memref<32x128xbf16, #tpu.memory_space<vmem>>, vector<32x128xbf16>
    %cst_62 = arith.constant dense<0.000000e+00> : vector<16x128xf32>
    %333 = tpu.matmul %331, %332, %cst_62 {dimension_numbers = #tpu.dot_dimension_numbers<[1], [0], [0], [1], [0, 0, 1, 1], [], []>} : vector<16x32xbf16>, vector<32x128xbf16>, vector<16x128xf32> -> vector<16x128xf32>
    %334 = vector.extract_strided_slice %333 {offsets = [0, 0], sizes = [16, 64], strides = [1, 1]} : vector<16x128xf32> to vector<16x64xf32>
    %cst_63 = arith.constant 5.000000e-01 : f32
    %335 = vector.broadcast %cst_63 : f32 to vector<16x64xf32>
    %336 = arith.mulf %335, %334 : vector<16x64xf32>
    %337 = math.tanh %336 : vector<16x64xf32>
    %cst_64 = arith.constant 1.000000e+00 : f32
    %338 = vector.broadcast %cst_64 : f32 to vector<16x64xf32>
    %339 = arith.addf %337, %338 : vector<16x64xf32>
    %cst_65 = arith.constant 5.000000e-01 : f32
    %340 = vector.broadcast %cst_65 : f32 to vector<16x64xf32>
    %341 = arith.mulf %340, %339 : vector<16x64xf32>
    %342 = arith.mulf %334, %341 : vector<16x64xf32>
    %343 = vector.extract_strided_slice %333 {offsets = [0, 64], sizes = [16, 64], strides = [1, 1]} : vector<16x128xf32> to vector<16x64xf32>
    %344 = arith.mulf %342, %343 : vector<16x64xf32>
    %345 = arith.truncf %344 : vector<16x64xf32> to vector<16x64xbf16>
    %c0_66 = arith.constant 0 : index
    %c0_67 = arith.constant 0 : index
    %346 = vector.load %arg6[%c0_66, %c0_67] : memref<64x32xbf16, #tpu.memory_space<vmem>>, vector<64x32xbf16>
    %cst_68 = arith.constant dense<0.000000e+00> : vector<16x32xf32>
    %347 = tpu.matmul %345, %346, %cst_68 {dimension_numbers = #tpu.dot_dimension_numbers<[1], [0], [0], [1], [0, 0, 1, 1], [], []>} : vector<16x64xbf16>, vector<64x32xbf16>, vector<16x32xf32> -> vector<16x32xf32>
    %348 = arith.addf %347, %320 : vector<16x32xf32>
    %c0_69 = arith.constant 0 : index
    %c0_70 = arith.constant 0 : index
    %349 = vector.load %arg7[%c0_69, %c0_70] : memref<16x32xf32, #tpu.memory_space<vmem>>, vector<16x32xf32>
    tpu.vector_store %arg7[%c0_69, %c0_70], %348 {strides = array<i32>} : memref<16x32xf32, #tpu.memory_space<vmem>>, vector<16x32xf32>,
    return
  }
}

</mosaic_0001>

<bundles_post_ra>
// kernel: tpu_custom_call.1
= control target key start
LH: loop header
LB: loop body
LE: loop exit
PB: predicated region body
PF: predicated region fallthrough
CT: control target
= control target key end

     0   :  { %12 = vsyncpa [#allocation3], 0  ;;  %s5107_s0 = inlined_call_operand.hbm [shape: f32[16,32], index: 0, kind: input, shape index: {}]   ;;  %s5108_s1 = inlined_call_operand.vmem [shape: bf16[32,288], index: 1, kind: input, shape index: {}]   ;;  %s5109_s2 = inlined_call_operand.hbm [shape: f32[8,64], index: 2, kind: input, shape index: {}]   ;;  %s5110_s3 = inlined_call_operand.vmem [shape: f32[24,64], index: 3, kind: input, shape index: {}]   ;;  %s5111_s4 = inlined_call_operand.vmem [shape: bf16[64,32], index: 4, kind: input, shape index: {}]   ;;  %s5112_s5 = inlined_call_operand.vmem [shape: bf16[32,128], index: 5, kind: input, shape index: {}]   ;;  %s5113_s6 = inlined_call_operand.vmem [shape: bf16[64,32], index: 6, kind: input, shape index: {}]   ;;  %s5114_s7 = inlined_call_operand.hbm [shape: f32[16,32], index: 7, kind: output, shape index: {}]  }
   0x1   :  { %13 = vsyncpa [#allocation6], 0 }
   0x2   :  { %14 = vsyncpa [#allocation4], 0  ;;  %s4229_s24 = smov [#allocation2]   ;;  %s4157_s28 = scalar_lea.hbm %s5107_s0, 256 }
   0x3   :  { %s20_s25 = sshll.u32 %s4229_s24, 4  ;;  %p4158_p0 = scmp.ne.s32.totalorder %s5107_s0, %s4157_s28  ;;  %s21_s25 = int_to_ptr.vmem [resolvable:$true] %s20_s25 }
   0x4   :  { %p4161_p1 = scmp.lt.u32.totalorder %s4157_s28, %s5107_s0 }
   0x6   :  { %p4163_p2 = pnand %p4161_p1, %p4158_p0 }
   0x8   :  { %4166 = shalt.err (!%p4163_p2)
}
   0x9   :  { %s4167_s10 = scalar_lea.vmem %s21_s25, 256  ;;  %p4172_p4 = scmp.lt.s32.totalorder %s21_s25, %s21_s25 }
   0xa   :  { %p4168_p3 = scmp.ne.s32.totalorder %s21_s25, %s4167_s10  ;;  %p4173_p5 = scmp.lt.s32.totalorder %s4167_s10, %s4167_s10 }
   0xc   :  { %p4174_p6 = por %p4173_p5, %p4172_p4 }
   0xe   :  { %p4175_p7 = pnand %p4174_p6, %p4168_p3 }
  0x10   :  { %4178 = shalt.err (!%p4175_p7)
}
  0x11   :  { %s4230_s11 = smov 128   ;;  %s4231_s12 = smov 8  }
  0x12   :  { %26 = dma.hbm_to_vmem [thread:$0]  %s5107_s0, 256, %s21_s25, [#allocation3], %s4230_s11, %s4230_s11, %s4231_s12  }
  0x13   :  { %s4232_s15 = smov [#allocation5]   ;;  %s4179_s19 = scalar_lea.hbm %s5109_s2, 128 }
  0x14   :  { %s35_s16 = sshll.u32 %s4232_s15, 4  ;;  %p4180_p8 = scmp.ne.s32.totalorder %s5109_s2, %s4179_s19  ;;  %s36_s16 = int_to_ptr.vmem [resolvable:$true] %s35_s16 }
  0x15   :  { %p4183_p9 = scmp.lt.u32.totalorder %s4179_s19, %s5109_s2 }
  0x17   :  { %p4185_p10 = pnand %p4183_p9, %p4180_p8 }
  0x19   :  { %4188 = shalt.err (!%p4185_p10)
}
  0x1a   :  { %s4189_s24 = scalar_lea.vmem %s36_s16, 128  ;;  %p4194_p12 = scmp.lt.s32.totalorder %s36_s16, %s36_s16 }
  0x1b   :  { %p4190_p11 = scmp.ne.s32.totalorder %s36_s16, %s4189_s24  ;;  %p4195_p13 = scmp.lt.s32.totalorder %s4189_s24, %s4189_s24 }
  0x1d   :  { %p4196_p0 = por %p4195_p13, %p4194_p12 }
  0x1f   :  { %p4197_p1 = pnand %p4196_p0, %p4190_p11 }
  0x21   :  { %4200 = shalt.err (!%p4197_p1)
}
  0x22   :  { %38 = dma.hbm_to_vmem [thread:$0]  %s5109_s2, 128, %s36_s16, [#allocation6]  }
  0x23   :  { %4223 = dma.done.wait [#allocation3], 256  }
  0x24   :  { %4224 = vsyncadd [#allocation3], 4294967040 }
  0x25   :  { %4225 = dma.done.wait [#allocation6], 128  }
  0x26   :  { %4226 = vsyncadd [#allocation6], 4294967168  ;;  %v54_v0 = vld [vmem:[#allocation2] sm:$0xff]  ;;  %vm66_vm0 = vcmask 261120   ;;  %v55_v1 = vld [vmem:[#allocation2 + $0x8] sm:$0xff]  ;;  %v4233_v9 = vmov 0   ;;  %v220_v43 = vlaneseq }
  0x27   :  { %v64_v2 = vmul.f32 %v54_v0, %v54_v0  ;;  %v65_v3 = vmul.f32 %v55_v1, %v55_v1  ;;  %v4045_v6 = vld [vmem:[%s5108_s1 + $0x4] ss:$12 sps:$4 sm:$0xff]   ;;  %v4047_v7 = vld [vmem:[%s5108_s1] ss:$12 sps:$4 sm:$0xff]   ;;  %v4048_v8 = vld [vmem:[%s5108_s1 + $0x1c] ss:$12 sps:$4 sm:$0xff]   ;;  %158 = vmatprep.mubr.bf16.mxu1 %v4233_v9 }
  0x28   :  { %126 = vmatprep.subr.bf16.mxu1 %v4045_v6  ;;  %v4050_v10 = vld [vmem:[%s5108_s1 + $0x18] ss:$12 sps:$4 sm:$0xff]   ;;  %v4234_v11 = vmov 0.0   ;;  %v4051_v22 = vld [vmem:[%s5108_s1 + $0x8] ss:$12 sps:$4 sm:$0xff]   ;;  %vm4235_vm1 = vmmov 0  }
  0x29   :  { %v67_v4 = vsel %vm66_vm0, %v64_v2, 0.0  ;;  %v70_v5 = vsel %vm66_vm0, %v65_v3, 0.0  ;;  %127 = vmatpush1.bf16.msra.mxu1 %v4047_v7  ;;  %v4052_v24 = vld [vmem:[%s5108_s1 + $0x20] ss:$12 sps:$4 sm:$0xff]   ;;  %vm339_vm2 = vcmask 1042432   ;;  %s4236_s16 = smov 96  }
  0x2a   :  { %68 = vadd.xlane.f32.xlu0 %v67_v4  ;;  %128 = vmatprep.subr.bf16.mxu1 %v4048_v8  ;;  %s4237_s17 = smov 112   ;;  %vm269_vm3 = vcmask 1040384   ;;  %vm304_vm4 = vcmask 1041408   ;;  %s4238_s1 = smov 64   ;;  %v3726_v42 = vld [vmem:[#allocation5] ss:$0 sm:$0xff] }
  0x2b   :  { %s4239_s18 = smov 80   ;;  %v4369_v44 = vshrl.u32 %v220_v43, 7  ;;  %v4374_v46 = vld [vmem:[#allocation5 + $0x3] sm:$0xf]  ;;  %v4240_v48 = vmov 1983009808  }
  0x2c   :  { %v719_v49 = vunpack.c.l.s4 %v4240_v48  ;;  %v4241_v51 = vmov 1934713408   ;;  %vm1461_vm10 = vcmask 1043456   ;;  %vm2342_vm11 = vcmask 15360  }
  0x2d   :  { %129 = vmatpush1.bf16.msra.mxu1 %v4050_v10  ;;  %v249_v45 = vsub.s32 3, %v4369_v44  ;;  %v751_v52 = vunpack.c.l.s4 %v4241_v51  ;;  %vm1364_vm13 = vcmask 31744  }
  0x2e   :  { %71 = vadd.xlane.f32.xlu0 %v70_v5  ;;  %3890 = vmatprep.subr.bf16.mxu1 %v4234_v11  ;;  %v720_v53 = vunpack.c.0.s8 %v719_v49 }
  0x2f   :  { %v250_v47 = vrot.slane %v4374_v46, %v249_v45  ;;  %v752_v57 = vunpack.c.0.s8 %v751_v52 }
  0x30   :  { %v4383_v58 = vsub.s32 %v720_v53, %v4369_v44 }
  0x31   :  { %v4391_v62 = vsub.s32 %v752_v57, %v4369_v44 }
  0xb7   :  { %v69_v12 = vpop.xlane.xlu0 %68 }
  0xb8   :  { %v74_v13 = vmul.f32 0.03125, %v69_v12 }
  0xba   :  { %v76_v14 = vadd.f32 1e-05, %v74_v13 }
  0xbb   :  { %v72_v15 = vpop.xlane.xlu0 %71 }
  0xbc   :  { %v75_v16 = vmul.f32 0.03125, %v72_v15  ;;  %4063 = vrsqrt.f32 %v76_v14 }
  0xbe   :  { %v77_v17 = vadd.f32 1e-05, %v75_v16 }
  0xc0   :  { %4065 = vrsqrt.f32 %v77_v17 }
  0xc6   :  { %v4064_v18 = vpop.eup %4063 }
  0xc7   :  { %v80_v20 = vmul.f32 %v4064_v18, %v54_v0 }
  0xca   :  { %v4066_v19 = vpop.eup %4065 }
  0xcb   :  { %v81_v21 = vmul.f32 %v4066_v19, %v55_v1 }
  0xcd   :  { %v82_v23 = vpack.c.bf16 %v81_v21, %v80_v20 }
  0xcf   :  { %3724 = vmatmul.mubr.msk.bf16.vlgmr.msra.gmra.mrb[0].mxu1 %vm66_vm0, %v82_v23 }
  0xd0   :  { %3891 = vmatpush3.bf16.msra.mxu1 %v4051_v22  ;;  %3894 = vmatprep.mubr.msk.bf16.mxu1 %vm4235_vm1, %v4234_v11 }
  0xd1   :  { %3892 = vmatprep.subr.bf16.mxu1 %v4234_v11 }
  0xd4   :  { %3893 = vmatpush3.bf16.msra.mxu1 %v4052_v24 }
  0xd7   :  { %3895 = vmatmul.mubr.msk.bf16.vlgmr.msra.gmra.mrb[4].mxu1 %vm66_vm0, %v82_v23 }
 0x1a2   :  { %v4337_v25 = vpop.f32.mrb[0].mxu1 }
 0x1a3   :  { %v4339_v26 = vpop.f32.mrb[1].mxu1  ;;  %v270_v28 = vrot.slane %v4337_v25, 7  ;;  %v340_v29 = vrot.slane %v4337_v25, 5  ;;  %v305_v33 = vrot.slane %v4337_v25, 6 }
 0x1a4   :  { %704 = vrot.lane.b32.xlu0 %v4339_v26, %s4236_s16  ;;  %698 = vrot.lane.b32.xlu1 %v4339_v26, %s4237_s17  ;;  %v4344_v27 = vpop.f32.mrb[2].mxu1 }
 0x1a5   :  { %v4348_v30 = vpop.f32.mrb[3].mxu1  ;;  %v341_v31 = vrot.slane %v4344_v27, 5  ;;  %v271_v32 = vrot.slane %v4344_v27, 7  ;;  %v306_v34 = vrot.slane %v4344_v27, 6 }
 0x1a7   :  { %v342_v35 = vsel %vm339_vm2, %v340_v29, %v341_v31  ;;  %v272_v36 = vsel %vm269_vm3, %v270_v28, %v271_v32  ;;  %v307_v37 = vsel %vm304_vm4, %v305_v33, %v306_v34 }
 0x1a8   :  { %273 = vrot.lane.b32.xlu0 %v270_v28, %s4238_s1  ;;  %710 = vrot.lane.b32.xlu1 %v4339_v26, %s4239_s18 }
 0x1aa   :  { %v203_v38 = vpop.f32.mrb[4].mxu1 }
 0x1ab   :  { %v3896_v39 = vpop.f32.mrb[5].mxu1  ;;  %v1698_v3 = vcombine.high %v203_v38, %v4234_v11  ;;  %v1705_v4 = vrot.slane %v203_v38, %v4383_v58 }
 0x1ac   :  { %345 = vrot.lane.b32.xlu0 %v342_v35, %s4238_s1  ;;  %275 = vrot.lane.b32.xlu1 %v272_v36, %s4238_s1  ;;  %v4361_v40 = vpop.f32.mrb[6].mxu1 }
 0x1ad   :  { %v3897_v41 = vpop.f32.mrb[7].mxu1  ;;  %v1712_v13 = vrot.slane %v1698_v3, %v4383_v58  ;;  %v1771_v3 = vrot.slane %v4361_v40, %v4383_v58 }
 0x1b0   :  { %706 = vrot.lane.b32.xlu0 %v4348_v30, %s4236_s16  ;;  %1692 = vrot.lane.b32.xlu1 %v203_v38, %s4237_s17 }
 0x1b4   :  { %215 = vrot.lane.b32.xlu0 %v3726_v42, %s4238_s1  ;;  %308 = vrot.lane.b32.xlu1 %v305_v33, %s4238_s1 }
 0x1b8   :  { %310 = vrot.lane.b32.xlu1 %v307_v37, %s4238_s1 }
 0x1bc   :  { %343 = vrot.lane.b32.xlu1 %v340_v29, %s4238_s1 }
 0x1c0   :  { %700 = vrot.lane.b32.xlu1 %v4348_v30, %s4237_s17 }
 0x1c4   :  { %712 = vrot.lane.b32.xlu1 %v4348_v30, %s4239_s18 }
 0x1c8   :  { %252 = vrot.lane.b32.xlu1 %v250_v47, %s4238_s1 }
 0x1cc   :  { %1694 = vrot.lane.b32.xlu1 %v4361_v40, %s4237_s17 }
 0x216   :  { %v699_v50 = vpop.permute.xlu1 %698  ;;  %v705_v54 = vpop.permute.xlu0 %704 }
 0x217   :  { %v717_v55 = vcombine.high %v4339_v26, %v705_v54  ;;  %v716_v20 = vcombine.low %v4339_v26, %v705_v54 }
 0x219   :  { %v4394_v63 = vrot.slane %v717_v55, %v4383_v58  ;;  %v724_v29 = vrot.slane %v716_v20, %v4383_v58 }
 0x21a   :  { %v711_v56 = vpop.permute.xlu1 %710  ;;  %v4406_v10 = vpop.permute.xlu0 %273 }
 0x21b   :  { %v733_v59 = vcombine.high %v699_v50, %v711_v56  ;;  %v732_v16 = vcombine.low %v699_v50, %v711_v56 }
 0x21d   :  { %v4386_v60 = vrot.slane %v733_v59, %v4383_v58  ;;  %v740_v23 = vrot.slane %v732_v16, %v4383_v58 }
 0x21e   :  { %v4388_v61 = vpop.permute.xlu1 %275  ;;  %v4417_v21 = vpop.permute.xlu0 %345 }
 0x21f   :  { %v765_v0 = vcombine.high %v4394_v63, %v4386_v60  ;;  %v748_v32 = vcombine.low %v724_v29, %v740_v23 }
 0x221   :  { %v4399_v2 = vrot.slane %v765_v0, %v4391_v62  ;;  %v4428_v36 = vrot.slane %v748_v32, %v4391_v62  ;;  %v279_v32 = vsel %vm269_vm3, 0.0, %v4406_v10 }
 0x222   :  { %v1693_v1 = vpop.permute.xlu1 %1692  ;;  %v707_v33 = vpop.permute.xlu0 %706 }
 0x223   :  { %v1713_v5 = vcombine.high %v1693_v1, %v4234_v11  ;;  %v1720_v6 = vrot.slane %v1693_v1, %v4383_v58  ;;  %v785_v35 = vcombine.high %v4348_v30, %v707_v33  ;;  %v784_v37 = vcombine.low %v4348_v30, %v707_v33 }
 0x224   :  { %v780_v45 = vcombine.high %v4428_v36, %v4234_v11 }
 0x225   :  { %v1727_v7 = vrot.slane %v1713_v5, %v4383_v58  ;;  %v1728_v8 = vcombine.low %v1705_v4, %v1720_v6  ;;  %v1729_v9 = vcombine.high %v1705_v4, %v1720_v6  ;;  %v799_v42 = vrot.slane %v785_v35, %v4383_v58 }
 0x226   :  { %v4408_v12 = vpop.permute.xlu1 %308  ;;  %v792_v50 = vrot.slane %v784_v37, %v4383_v58 }
 0x227   :  { %v1736_v14 = vrot.slane %v1728_v8, %v4391_v62  ;;  %v1743_v15 = vrot.slane %v1729_v9, %v4391_v62  ;;  %v1744_v17 = vcombine.low %v1712_v13, %v1727_v7  ;;  %v1745_v49 = vcombine.high %v1712_v13, %v1727_v7 }
 0x228   :  { %v749_v7 = vcombine.high %v724_v29, %v740_v23  ;;  %v4482_v29 = vand.u32 7, %v4369_v44 }
 0x229   :  { %1830 = vxpose.xlu0.b32.start.end [1/1] (short) (narrow) %v1736_v14, 16  ;;  %v1760_v19 = vcombine.high %v1736_v14, %v4234_v11  ;;  %v1761_v22 = vcombine.high %v1743_v15, %v4234_v11  ;;  %v1752_v24 = vrot.slane %v1744_v17, %v4391_v62  ;;  %v1759_v57 = vrot.slane %v1745_v49, %v4391_v62  ;;  %v63_v14 = vld [vmem:[%s5110_s3 + $0x14] sm:$0x3] }
 0x22a   :  { %v4413_v18 = vpop.permute.xlu1 %310  ;;  %v4457_v8 = vrot.slane %v749_v7, %v4391_v62  ;;  %3948 = vmatprep.subr.msk.mxu1 %vm304_vm4, %v63_v14  ;;  %v764_v17 = vcombine.low %v4394_v63, %v4386_v60  ;;  %v3727_v63 = vld [vmem:[#allocation5 + $0x1] ss:$0 sm:$0xff]  ;;  %vm280_vm5 = vcmp.ge.s32.totalorder %v4482_v29, 1  ;;  %vm315_vm7 = vcmp.ge.s32.totalorder %v4482_v29, 2 }
 0x22b   :  { %1862 = vxpose.xlu1.b32.start.end [1/1] (short) (narrow) %v1760_v19, 16  ;;  %v1762_v31 = vcombine.high %v1752_v24, %v4234_v11  ;;  %3949 = vmatpush3.msk.msra.mxu1 %vm304_vm4, %v63_v14  ;;  %v1763_v35 = vcombine.high %v1759_v57, %v4234_v11  ;;  %vm350_vm12 = vcmp.ge.s32.totalorder %v4482_v29, 3 }
 0x22c   :  { %4010 = vmatprep.subr.bf16.mxu1 %v4234_v11 }
 0x22e   :  { %v4422_v28 = vpop.permute.xlu1 %343  ;;  %1926 = vxpose.xlu0.b32.start.end [1/1] (short) (narrow) %v1761_v22, 16  ;;  %v4475_v22 = vrot.slane %v764_v17, %v4391_v62 }
 0x230   :  { %1894 = vxpose.xlu1.b32.start.end [1/1] (short) (narrow) %v1743_v15, 16  ;;  %v1764_v15 = vcombine.high %v4361_v40, %v4234_v11 }
 0x232   :  { %v701_v34 = vpop.permute.xlu1 %700  ;;  %v1778_v20 = vrot.slane %v1764_v15, %v4383_v58 }
 0x233   :  { %1990 = vxpose.xlu0.b32.start.end [1/1] (short) (narrow) %v1762_v31, 16  ;;  %v290_v31 = vsub.s32 2, %v4369_v44 }
 0x235   :  { %1958 = vxpose.xlu1.b32.start.end [1/1] (short) (narrow) %v1752_v24, 16 }
 0x236   :  { %v713_v38 = vpop.permute.xlu1 %712 }
 0x237   :  { %v800_v39 = vcombine.low %v701_v34, %v713_v38  ;;  %v801_v41 = vcombine.high %v701_v34, %v713_v38  ;;  %v291_v34 = vrot.slane %v4374_v46, %v290_v31  ;;  %v325_v38 = vsub.s32 1, %v4369_v44 }
 0x238   :  { %v781_v31 = vcombine.high %v4457_v8, %v4234_v11 }
 0x239   :  { %v815_v43 = vrot.slane %v801_v41, %v4383_v58  ;;  %v808_v47 = vrot.slane %v800_v39, %v4383_v58  ;;  %v314_v41 = vsel %vm304_vm4, 0.0, %v4408_v12 }
 0x23a   :  { %v4436_v48 = vpop.permute.xlu1 %252  ;;  %884 = vxpose.xlu1.b32.start.end [1/1] (short) (narrow) %v780_v45, 16  ;;  %v321_v45 = vsel %vm315_vm7, %v314_v41, 0.0  ;;  %vm3414_vm7 = vcmask 1045504  }
 0x23b   :  { %v832_v51 = vcombine.low %v799_v42, %v815_v43  ;;  %v833_v52 = vcombine.high %v799_v42, %v815_v43  ;;  %v816_v53 = vcombine.low %v792_v50, %v808_v47  ;;  %v817_v54 = vcombine.high %v792_v50, %v808_v47 }
 0x23c   :  { %v326_v43 = vrot.slane %v4374_v46, %v325_v38  ;;  %v4501_v47 = vsub.s32 0, %v4369_v44 }
 0x23d   :  { %v4440_v55 = vrot.slane %v832_v51, %v4391_v62  ;;  %v4444_v59 = vrot.slane %v833_v52, %v4391_v62  ;;  %v4447_v0 = vrot.slane %v816_v53, %v4391_v62  ;;  %v4450_v1 = vrot.slane %v817_v54, %v4391_v62 }
 0x23e   :  { %v1695_v56 = vpop.permute.xlu1 %1694  ;;  %v361_v12 = vrot.slane %v4374_v46, %v4501_v47 }
 0x23f   :  { %v1786_v4 = vrot.slane %v1695_v56, %v4383_v58  ;;  %2022 = vxpose.xlu1.b32.start.end [1/1] (short) (narrow) %v1759_v57, 16  ;;  %v1779_v13 = vcombine.high %v1695_v56, %v4234_v11  ;;  %v850_v14 = vcombine.high %v4440_v55, %v4234_v11  ;;  %v848_v41 = vcombine.high %v4447_v0, %v4234_v11 }
 0x241   :  { %v1794_v5 = vcombine.low %v1771_v3, %v1786_v4  ;;  %v1795_v9 = vcombine.high %v1771_v3, %v1786_v4  ;;  %v1793_v19 = vrot.slane %v1779_v13, %v4383_v58  ;;  %v222_v58 = vadd.s32 8, %v4369_v44 }
 0x243   :  { %v1802_v6 = vrot.slane %v1794_v5, %v4391_v62  ;;  %v1809_v16 = vrot.slane %v1795_v9, %v4391_v62  ;;  %v1810_v40 = vcombine.low %v1778_v20, %v1793_v19  ;;  %v1811_v24 = vcombine.high %v1778_v20, %v1793_v19 }
 0x244   :  { %v234_v33 = vand.u32 7, %v222_v58  ;;  %v349_v9 = vsel %vm339_vm2, 0.0, %v4422_v28  ;;  %v851_v19 = vcombine.high %v4444_v59, %v4234_v11 }
 0x245   :  { %2086 = vxpose.xlu1.b32.start.end [1/1] (short) (narrow) %v1802_v6, 16  ;;  %v1818_v23 = vrot.slane %v1810_v40, %v4391_v62  ;;  %v1825_v60 = vrot.slane %v1811_v24, %v4391_v62  ;;  %v286_v62 = vsel %vm280_vm5, %v279_v32, 0.0  ;;  %v1826_v10 = vcombine.high %v1802_v6, %v4234_v11 }
 0x246   :  { %vm281_vm6 = vcmp.ge.s32.totalorder %v234_v33, 1  ;;  %v292_v37 = vmul.f32 %v291_v34, %v286_v62  ;;  %vm316_vm8 = vcmp.ge.s32.totalorder %v234_v33, 2  ;;  %vm351_vm9 = vcmp.ge.s32.totalorder %v234_v33, 3  ;;  %v61_v33 = vld [vmem:[%s5110_s3 + $0x8] sm:$0xff] }
 0x247   :  { %v287_v39 = vsel %vm281_vm6, %v4388_v61, 0.0  ;;  %v327_v61 = vmul.f32 %v326_v43, %v321_v45  ;;  %v322_v49 = vsel %vm316_vm8, %v4413_v18, 0.0  ;;  %v357_v51 = vsel %vm351_vm9, %v4417_v21, 0.0  ;;  %v4520_v21 = vpop.permute.xlu0 %215 }
 0x248   :  { %v293_v42 = vmul.f32 %v291_v34, %v287_v39  ;;  %v328_v50 = vmul.f32 %v326_v43, %v322_v49  ;;  %v1827_v52 = vcombine.high %v1809_v16, %v4234_v11  ;;  %v363_v53 = vmul.f32 %v361_v12, %v357_v51 }
 0x249   :  { %v1828_v18 = vcombine.high %v1818_v23, %v4234_v11  ;;  %v1829_v46 = vcombine.high %v1825_v60, %v4234_v11  ;;  %v782_v62 = vcombine.high %v4475_v22, %v4234_v11  ;;  %v849_v45 = vcombine.high %v4450_v1, %v4234_v11 }
 0x24a   :  { %916 = vxpose.xlu1.b32.start.end [1/1] (short) (narrow) %v4457_v8, 16  ;;  %vm2933_vm5 = vcmask 523264   ;;  %vm3412_vm6 = vcmask 1044480   ;;  %vm3416_vm8 = vcmask 1046528  }
 0x24f   :  { %2150 = vxpose.xlu1.b32.start.end [1/1] (short) (narrow) %v1809_v16, 16  ;;  %v356_v16 = vsel %vm350_vm12, %v349_v9, 0.0  ;;  %v218_v9 = vadd.f32 %v4520_v21, %v4339_v26 }
 0x250   :  { %v362_v20 = vmul.f32 %v361_v12, %v356_v16  ;;  %v4242_v16 = vmov 1966171168  }
 0x251   :  { %vm386_vm15 = vcmp.gt.f32.partialorder %v218_v9, 20.0 }
 0x254   :  { %980 = vxpose.xlu1.b32.start.end [1/1] (short) (narrow) %v4475_v22, 16  ;;  %v4574_v22 = vadd.f32 %v4520_v21, %v4348_v30 }
 0x256   :  { %vm387_vm14 = vcmp.gt.f32.partialorder %v4574_v22, 20.0 }
 0x259   :  { %2214 = vxpose.xlu1.b32.start.end [1/1] (short) (narrow) %v1818_v23, 16 }
 0x25e   :  { %2278 = vxpose.xlu1.b32.start.end [1/1] (short) (narrow) %v1825_v60, 16 }
 0x260   :  { %262 = vrot.lane.b32.xlu0 %v3727_v63, %s4238_s1 }
 0x27e   :  { %2054 = vxpose.xlu0.b32.start.end [1/1] (short) (narrow) %v1763_v35, 16 }
 0x280   :  { %296 = vrot.lane.b32.xlu1 %v292_v37, %s4238_s1  ;;  %v783_v37 = vcombine.high %v4399_v2, %v4234_v11 }
 0x283   :  { %2118 = vxpose.xlu0.b32.start.end [1/1] (short) (narrow) %v1826_v10, 16 }
 0x284   :  { %298 = vrot.lane.b32.xlu1 %v293_v42, %s4238_s1 }
 0x288   :  { %852 = vxpose.xlu0.b32.start.end [1/1] (short) (narrow) %v4428_v36, 16  ;;  %331 = vrot.lane.b32.xlu1 %v327_v61, %s4238_s1  ;;  %v62_v36 = vld [vmem:[%s5110_s3 + $0x10] sm:$0xf]  ;;  %v385_v61 = vmin.f32 %v4574_v22, 20.0 }
 0x289   :  { %3898 = vmatprep.subr.msk.mxu0 %vm1461_vm10, %v62_v36 }
 0x28a   :  { %3899 = vmatpush3.msk.msra.mxu0 %vm1461_vm10, %v62_v36  ;;  %v390_v12 = vmul.f32 1.442695, %v385_v61 }
 0x28b   :  { %3998 = vmatprep.subr.bf16.mxu0 %v4234_v11 }
 0x28c   :  { %333 = vrot.lane.b32.xlu1 %v328_v50, %s4238_s1  ;;  %4067 = vpow2.f32 %v390_v12 }
 0x28d   :  { %2182 = vxpose.xlu0.b32.start.end [1/1] (short) (narrow) %v1827_v52, 16 }
 0x290   :  { %368 = vrot.lane.b32.xlu1 %v363_v53, %s4238_s1 }
 0x292   :  { %2246 = vxpose.xlu0.b32.start.end [1/1] (short) (narrow) %v1828_v18, 16 }
 0x297   :  { %2310 = vxpose.xlu0.b32.start.end [1/1] (short) (narrow) %v1829_v46, 16  ;;  %v4068_v46 = vpop.eup %4067 }
 0x2a9   :  { %v1846_v54 = vpop.trf.xlu0 }
 0x2aa   :  { %3950 = vmatprep.mubr.msk.f32.mxu1 %vm2342_vm11, %v1846_v54 }
 0x2ab   :  { %v1878_v56 = vpop.trf.xlu1 }
 0x2ad   :  { %v1847_v57 = vpop.trf.xlu0 }
 0x2ae   :  { %3951 = vmatmul.mubr.msk.f32.vlgmr.msra.gmra.mrb[8].mxu1 %vm2342_vm11, %v1847_v57  ;;  %v393_v57 = vadd.f32 1.0, %v4068_v46 }
 0x2af   :  { %3953 = vmatprep.mubr.msk.f32.mxu1 %vm2342_vm11, %v1878_v56  ;;  %v1879_v3 = vpop.trf.xlu1 }
 0x2b0   :  { %4069 = vlog2.f32 %v393_v57 }
 0x2b1   :  { %v1942_v4 = vpop.trf.xlu0 }
 0x2b2   :  { %3954 = vmatmul.mubr.msk.f32.gmra.mrb[10].mxu1 %vm2342_vm11, %v1879_v3 }
 0x2b3   :  { %v1910_v5 = vpop.trf.xlu1 }
 0x2b4   :  { %3956 = vmatprep.mubr.msk.f32.mxu1 %vm2342_vm11, %v1910_v5 }
 0x2b5   :  { %v1943_v7 = vpop.trf.xlu0 }
 0x2b7   :  { %v1911_v6 = vpop.trf.xlu1 }
 0x2b8   :  { %3957 = vmatmul.mubr.msk.f32.gmra.mrb[12].mxu1 %vm2342_vm11, %v1911_v6 }
 0x2b9   :  { %1044 = vxpose.xlu1.b32.start.end [1/1] (short) (narrow) %v4399_v2, 16  ;;  %3959 = vmatprep.mubr.msk.f32.mxu1 %vm2342_vm11, %v1942_v4  ;;  %v2006_v15 = vpop.trf.xlu0 }
 0x2bb   :  { %v1974_v13 = vpop.trf.xlu1 }
 0x2bc   :  { %3960 = vmatmul.mubr.msk.f32.gmra.mrb[14].mxu1 %vm2342_vm11, %v1943_v7 }
 0x2bd   :  { %3962 = vmatprep.mubr.msk.f32.mxu1 %vm2342_vm11, %v1974_v13  ;;  %v2007_v40 = vpop.trf.xlu0 }
 0x2be   :  { %1268 = vxpose.xlu1.b32.start.end [1/1] (short) (narrow) %v850_v14, 16  ;;  %v384_v14 = vmin.f32 %v218_v9, 20.0 }
 0x2bf   :  { %v1975_v17 = vpop.trf.xlu1 }
 0x2c0   :  { %3963 = vmatmul.mubr.msk.f32.gmra.mrb[16].mxu1 %vm2342_vm11, %v1975_v17  ;;  %v416_v17 = vunpack.c.l.s4 %v4242_v16 }
 0x2c1   :  { %3965 = vmatprep.mubr.msk.f32.mxu1 %vm2342_vm11, %v2006_v15  ;;  %v4070_v15 = vpop.eup %4069 }
 0x2c3   :  { %1332 = vxpose.xlu1.b32.start.end [1/1] (short) (narrow) %v851_v19, 16  ;;  %v4541_v28 = vpop.trf.xlu1 }
 0x2c4   :  { %366 = vrot.lane.b32.xlu0 %v362_v20, %s4238_s1  ;;  %3966 = vmatmul.mubr.msk.f32.gmra.mrb[18].mxu1 %vm2342_vm11, %v2007_v40  ;;  %v388_v40 = vmul.f32 1.442695, %v384_v14 }
 0x2c7   :  { %v4545_v23 = vpop.trf.xlu1 }
 0x2cb   :  { %v2038_v24 = vpop.trf.xlu1 }
 0x2cc   :  { %3968 = vmatprep.mubr.msk.f32.mxu1 %vm2342_vm11, %v2038_v24  ;;  %v417_v24 = vunpack.c.0.s8 %v416_v17 }
 0x2cf   :  { %v2039_v60 = vpop.trf.xlu1 }
 0x2d0   :  { %3969 = vmatmul.mubr.msk.f32.gmra.mrb[20].mxu1 %vm2342_vm11, %v2039_v60 }
 0x2d2   :  { %v4570_v42 = vpop.permute.xlu0 %262 }
 0x2d3   :  { %v2102_v63 = vpop.trf.xlu1 }
 0x2d7   :  { %v2103_v29 = vpop.trf.xlu1 }
 0x2db   :  { %v4549_v58 = vpop.trf.xlu1 }
 0x2df   :  { %v4553_v32 = vpop.trf.xlu1 }
 0x2e2   :  { %948 = vxpose.xlu0.b32.start.end [1/1] (short) (narrow) %v781_v31, 16 }
 0x2e3   :  { %v2166_v34 = vpop.trf.xlu1 }
 0x2e5   :  { %596 = vrot.lane.b32.xlu1 %v61_v33, %s4238_s1 }
 0x2e7   :  { %1012 = vxpose.xlu0.b32.start.end [1/1] (short) (narrow) %v782_v62, 16  ;;  %v2167_v35 = vpop.trf.xlu1 }
 0x2eb   :  { %v4563_v38 = vpop.trf.xlu1 }
 0x2ec   :  { %1076 = vxpose.xlu0.b32.start.end [1/1] (short) (narrow) %v783_v37, 16 }
 0x2ef   :  { %v4565_v8 = vpop.trf.xlu1 }
 0x2f1   :  { %1108 = vxpose.xlu0.b32.start.end [1/1] (short) (narrow) %v4447_v0, 16 }
 0x2f3   :  { %v2230_v39 = vpop.trf.xlu1 }
 0x2f6   :  { %1140 = vxpose.xlu0.b32.start.end [1/1] (short) (narrow) %v848_v41, 16 }
 0x2f7   :  { %v2231_v10 = vpop.trf.xlu1 }
 0x2fb   :  { %1172 = vxpose.xlu0.b32.start.end [1/1] (short) (narrow) %v4450_v1, 16  ;;  %v2294_v2 = vpop.trf.xlu1 }
 0x2fe   :  { %v2070_v43 = vpop.trf.xlu0 }
 0x2ff   :  { %3971 = vmatprep.mubr.msk.f32.mxu1 %vm2342_vm11, %v2070_v43  ;;  %v4581_v0 = vpop.trf.xlu1 }
 0x300   :  { %1204 = vxpose.xlu0.b32.start.end [1/1] (short) (narrow) %v849_v45, 16 }
 0x302   :  { %v2071_v49 = vpop.trf.xlu0 }
 0x303   :  { %3972 = vmatmul.mubr.msk.f32.gmra.mrb[22].mxu1 %vm2342_vm11, %v2071_v49  ;;  %v4584_v30 = vpop.permute.xlu1 %296 }
 0x304   :  { %3974 = vmatprep.mubr.msk.f32.mxu1 %vm2342_vm11, %v2102_v63 }
 0x305   :  { %1236 = vxpose.xlu0.b32.start.end [1/1] (short) (narrow) %v4440_v55, 16  ;;  %v256_v55 = vmul.f32 %v4436_v48, %v4344_v27 }
 0x306   :  { %v2134_v50 = vpop.trf.xlu0 }
 0x307   :  { %3975 = vmatmul.mubr.msk.f32.gmra.mrb[24].mxu1 %vm2342_vm11, %v2103_v29  ;;  %v299_v1 = vpop.permute.xlu1 %298  ;;  %v266_v18 = vadd.f32 %v4570_v42, %v256_v55  ;;  %v4628_v29 = vsub.s32 %v417_v24, %v4369_v44 }
 0x308   :  { %3977 = vmatprep.mubr.msk.f32.mxu1 %vm2342_vm11, %v2134_v50 }
 0x30a   :  { %v2135_v51 = vpop.trf.xlu0  ;;  %1300 = vxpose.xlu0.b32.start.end [1/1] (short) (narrow) %v4444_v59, 16  ;;  %v303_v59 = vadd.f32 %v299_v1, %v266_v18 }
 0x30b   :  { %3978 = vmatmul.mubr.msk.f32.gmra.mrb[26].mxu1 %vm2342_vm11, %v2135_v51  ;;  %v4592_v52 = vpop.permute.xlu1 %331 }
 0x30c   :  { %3980 = vmatprep.mubr.msk.f32.mxu1 %vm2342_vm11, %v2166_v34  ;;  %v255_v34 = vmul.f32 %v4436_v48, %v4337_v25  ;;  %v3794_v48 = vld [vmem:[#allocation5 + $0x2] ss:$0 sm:$0xff] }
 0x30e   :  { %v868_v53 = vpop.trf.xlu0  ;;  %v265_v44 = vadd.f32 %v4570_v42, %v255_v34 }
 0x30f   :  { %3981 = vmatmul.mubr.msk.f32.gmra.mrb[28].mxu1 %vm2342_vm11, %v2167_v35  ;;  %3900 = vmatprep.mubr.msk.f32.mxu0 %vm1364_vm13, %v868_v53  ;;  %v334_v36 = vpop.permute.xlu1 %333 }
 0x310   :  { %v338_v56 = vadd.f32 %v334_v36, %v303_v59  ;;  %v302_v37 = vadd.f32 %v4584_v30, %v265_v44 }
 0x312   :  { %v869_v54 = vpop.trf.xlu0  ;;  %v337_v41 = vadd.f32 %v4592_v52, %v302_v37 }
 0x313   :  { %3901 = vmatmul.mubr.msk.f32.vlgmr.msra.gmra.mrb[0].mxu0 %vm1364_vm13, %v869_v54  ;;  %v369_v3 = vpop.permute.xlu1 %368 }
 0x314   :  { %3903 = vmatprep.mubr.msk.f32.mxu0 %vm1364_vm13, %v4541_v28  ;;  %v373_v4 = vadd.f32 %v369_v3, %v338_v56 }
 0x316   :  { %v2198_v5 = vpop.trf.xlu0  ;;  %v375_v6 = vmul.f32 0.5, %v373_v4 }
 0x317   :  { %3904 = vmatmul.mubr.msk.f32.gmra.mrb[2].mxu0 %vm1364_vm13, %v4545_v23  ;;  %3983 = vmatprep.mubr.msk.f32.mxu1 %vm2342_vm11, %v2198_v5  ;;  %v397_v23 = vmul.f32 0.6931472, %v4070_v15 }
 0x318   :  { %3906 = vmatprep.mubr.msk.f32.mxu0 %vm1364_vm13, %v4549_v58  ;;  %4071 = vtanh.f32 %v375_v6 }
 0x319   :  { %4073 = vpow2.f32 %v388_v40  ;;  %v4625_v63 = vsel %vm387_vm14, %v4574_v22, %v397_v23 }
 0x31a   :  { %v2199_v7 = vpop.trf.xlu0 }
 0x31b   :  { %3907 = vmatmul.mubr.msk.f32.gmra.mrb[4].mxu0 %vm1364_vm13, %v4553_v32  ;;  %3984 = vmatmul.mubr.msk.f32.gmra.mrb[30].mxu1 %vm2342_vm11, %v2199_v7 }
 0x31c   :  { %3986 = vmatprep.mubr.msk.f32.mxu1 %vm2342_vm11, %v2230_v39  ;;  %v60_v39 = vld [vmem:[%s5110_s3] sm:$0xff] }
 0x31e   :  { %v2262_v13 = vpop.trf.xlu0 }
 0x31f   :  { %3987 = vmatmul.mubr.msk.f32.gmra.mrb[32].mxu1 %vm2342_vm11, %v2231_v10 }
 0x320   :  { %3989 = vmatprep.mubr.msk.f32.mxu1 %vm2342_vm11, %v2262_v13 }
 0x322   :  { %v2263_v19 = vpop.trf.xlu0  ;;  %v4072_v20 = vpop.eup %4071 }
 0x323   :  { %3990 = vmatmul.mubr.msk.f32.gmra.mrb[34].mxu1 %vm2342_vm11, %v2263_v19  ;;  %v379_v28 = vadd.f32 1.0, %v4072_v20  ;;  %v4074_v35 = vpop.eup %4073 }
 0x324   :  { %3992 = vmatprep.mubr.msk.f32.mxu1 %vm2342_vm11, %v2294_v2  ;;  %v392_v10 = vadd.f32 1.0, %v4074_v35 }
 0x325   :  { %v381_v26 = vmul.f32 0.5, %v379_v28 }
 0x326   :  { %v2326_v21 = vpop.trf.xlu0  ;;  %4075 = vlog2.f32 %v392_v10 }
 0x327   :  { %3993 = vmatmul.mubr.msk.f32.gmra.mrb[36].mxu1 %vm2342_vm11, %v4581_v0  ;;  %v4621_v60 = vmul.f32 %v381_v26, %v373_v4 }
 0x328   :  { %3995 = vmatprep.mubr.msk.f32.mxu1 %vm2342_vm11, %v2326_v21 }
 0x329   :  { %v401_v58 = vmul.f32 %v4625_v63, %v4621_v60 }
 0x32a   :  { %v2327_v31 = vpop.trf.xlu0 }
 0x32b   :  { %3996 = vmatmul.mubr.msk.f32.gmra.mrb[38].mxu1 %vm2342_vm11, %v2327_v31  ;;  %v2725_v32 = vrot.slane %v401_v58, %v4628_v29  ;;  %v2718_v54 = vcombine.high %v401_v58, %v401_v58 }
 0x32c   :  { %4014 = vmatprep.mubr.msk.bf16.mxu1 %vm4235_vm1, %v4234_v11 }
 0x32d   :  { %v2741_v33 = vrot.slane %v2725_v32, %v4628_v29  ;;  %v2733_v53 = vcombine.high %v2725_v32, %v2725_v32  ;;  %v2732_v5 = vrot.slane %v2718_v54, %v4628_v29 }
 0x32f   :  { %v2802_v62 = vrot.slane %v2741_v33, %v4501_v47  ;;  %v2755_v57 = vrot.slane %v2733_v53, %v4628_v29  ;;  %v2763_v7 = vcombine.high %v2741_v33, %v2741_v33  ;;  %v2748_v16 = vrot.slane %v2732_v5, %v4628_v29 }
 0x330   :  { %v4076_v42 = vpop.eup %4075  ;;  %v2734_v40 = vcombine.high %v2732_v5, %v2732_v5 }
 0x331   :  { %2847 = vrot.lane.b32.xlu1 %v2802_v62, %s4238_s1  ;;  %v395_v0 = vmul.f32 0.6931472, %v4076_v42  ;;  %v2806_v6 = vrot.slane %v2755_v57, %v4501_v47  ;;  %v2810_v15 = vrot.slane %v2763_v7, %v4501_v47  ;;  %v2765_v20 = vcombine.high %v2755_v57, %v2755_v57 }
 0x332   :  { %v2818_v28 = vrot.slane %v2748_v16, %v4501_v47  ;;  %v2762_v58 = vrot.slane %v2734_v40, %v4628_v29  ;;  %v2764_v62 = vcombine.high %v2748_v16, %v2748_v16 }
 0x333   :  { %v4651_v30 = vsel %vm386_vm15, %v218_v9, %v395_v0  ;;  %v2814_v21 = vrot.slane %v2765_v20, %v4501_v47 }
 0x334   :  { %v2822_v34 = vrot.slane %v2762_v58, %v4501_v47 }
 0x336   :  { %v367_v22 = vpop.permute.xlu0 %366 }
 0x337   :  { %v372_v2 = vadd.f32 %v367_v22, %v337_v41  ;;  %594 = vrot.lane.b32.xlu0 %v60_v39, %s4238_s1  ;;  %v2826_v39 = vrot.slane %v2764_v62, %v4501_v47  ;;  %v2766_v41 = vcombine.high %v2762_v58, %v2762_v58 }
 0x339   :  { %v374_v43 = vmul.f32 0.5, %v372_v2  ;;  %v1060_v37 = vpop.trf.xlu1  ;;  %v2830_v10 = vrot.slane %v2766_v41, %v4501_v47 }
 0x33b   :  { %4077 = vtanh.f32 %v374_v43  ;;  %3430 = vrot.lane.b32.xlu0 %v3794_v48, %s4238_s1 }
 0x33d   :  { %v1061_v22 = vpop.trf.xlu1 }
 0x345   :  { %v4078_v45 = vpop.eup %4077 }
 0x346   :  { %v378_v61 = vadd.f32 1.0, %v4078_v45 }
 0x348   :  { %v380_v49 = vmul.f32 0.5, %v378_v61 }
 0x34a   :  { %v4649_v12 = vmul.f32 %v380_v49, %v372_v2 }
 0x34c   :  { %v400_v50 = vmul.f32 %v4651_v30, %v4649_v12 }
 0x34e   :  { %v2669_v1 = vcombine.high %v400_v50, %v400_v50  ;;  %v2676_v51 = vrot.slane %v400_v50, %v4628_v29 }
 0x350   :  { %v2692_v52 = vrot.slane %v2676_v51, %v4628_v29  ;;  %v2684_v55 = vcombine.high %v2676_v51, %v2676_v51  ;;  %v2683_v18 = vrot.slane %v2669_v1, %v4628_v29 }
 0x352   :  { %v2770_v36 = vrot.slane %v2692_v52, %v4501_v47  ;;  %v2706_v46 = vrot.slane %v2684_v55, %v4628_v29  ;;  %v2714_v59 = vcombine.high %v2692_v52, %v2692_v52  ;;  %v2699_v4 = vrot.slane %v2683_v18, %v4628_v29 }
 0x353   :  { %v2685_v14 = vcombine.high %v2683_v18, %v2683_v18 }
 0x354   :  { %2831 = vrot.lane.b32.xlu0 %v2770_v36, %s4238_s1  ;;  %v2774_v56 = vrot.slane %v2706_v46, %v4501_v47  ;;  %v2778_v3 = vrot.slane %v2714_v59, %v4501_v47  ;;  %v2716_v9 = vcombine.high %v2706_v46, %v2706_v46  ;;  %v2786_v13 = vrot.slane %v2699_v4, %v4501_v47 }
 0x355   :  { %v2713_v19 = vrot.slane %v2685_v14, %v4628_v29  ;;  %v2715_v26 = vcombine.high %v2699_v4, %v2699_v4 }
 0x356   :  { %2833 = vrot.lane.b32.xlu1 %v2774_v56, %s4238_s1  ;;  %v2782_v17 = vrot.slane %v2716_v9, %v4501_v47  ;;  %v1284_v56 = vpop.trf.xlu1 }
 0x357   :  { %v2790_v24 = vrot.slane %v2713_v19, %v4501_v47  ;;  %v2794_v32 = vrot.slane %v2715_v26, %v4501_v47  ;;  %v2717_v33 = vcombine.high %v2713_v19, %v2713_v19 }
 0x358   :  { %2835 = vrot.lane.b32.xlu0 %v2778_v3, %s4238_s1 }
 0x359   :  { %v2798_v35 = vrot.slane %v2717_v33, %v4501_v47 }
 0x35a   :  { %2849 = vrot.lane.b32.xlu1 %v2806_v6, %s4238_s1  ;;  %v1285_v5 = vpop.trf.xlu1 }
 0x35c   :  { %2839 = vrot.lane.b32.xlu0 %v2786_v13, %s4238_s1 }
 0x35e   :  { %2851 = vrot.lane.b32.xlu1 %v2810_v15, %s4238_s1  ;;  %v1348_v9 = vpop.trf.xlu1 }
 0x360   :  { %2837 = vrot.lane.b32.xlu0 %v2782_v17, %s4238_s1 }
 0x362   :  { %2855 = vrot.lane.b32.xlu1 %v2818_v28, %s4238_s1  ;;  %v964_v23 = vpop.trf.xlu0  ;;  %v1349_v16 = vpop.trf.xlu1 }
 0x363   :  { %3909 = vmatprep.mubr.msk.f32.mxu0 %vm1364_vm13, %v964_v23 }
 0x364   :  { %2841 = vrot.lane.b32.xlu0 %v2790_v24, %s4238_s1 }
 0x366   :  { %2853 = vrot.lane.b32.xlu1 %v2814_v21, %s4238_s1  ;;  %v965_v31 = vpop.trf.xlu0  ;;  %v4727_v19 = vpop.permute.xlu1 %596 }
 0x367   :  { %3910 = vmatmul.mubr.msk.f32.gmra.mrb[6].mxu0 %vm1364_vm13, %v965_v31 }
 0x368   :  { %2843 = vrot.lane.b32.xlu0 %v2794_v32, %s4238_s1  ;;  %3912 = vmatprep.mubr.msk.f32.mxu0 %vm1364_vm13, %v4563_v38 }
 0x36a   :  { %2857 = vrot.lane.b32.xlu1 %v2822_v34, %s4238_s1  ;;  %v1028_v44 = vpop.trf.xlu0 }
 0x36b   :  { %3913 = vmatmul.mubr.msk.f32.gmra.mrb[8].mxu0 %vm1364_vm13, %v4565_v8 }
 0x36c   :  { %2845 = vrot.lane.b32.xlu0 %v2798_v35, %s4238_s1  ;;  %3915 = vmatprep.mubr.msk.f32.mxu0 %vm1364_vm13, %v1028_v44 }
 0x36e   :  { %2859 = vrot.lane.b32.xlu1 %v2826_v39, %s4238_s1  ;;  %v1029_v38 = vpop.trf.xlu0 }
 0x36f   :  { %3916 = vmatmul.mubr.msk.f32.gmra.mrb[10].mxu0 %vm1364_vm13, %v1029_v38 }
 0x370   :  { %3918 = vmatprep.mubr.msk.f32.mxu0 %vm1364_vm13, %v1060_v37 }
 0x372   :  { %2861 = vrot.lane.b32.xlu1 %v2830_v10, %s4238_s1  ;;  %v1092_v8 = vpop.trf.xlu0 }
 0x373   :  { %3919 = vmatmul.mubr.msk.f32.gmra.mrb[12].mxu0 %vm1364_vm13, %v1061_v22 }
 0x374   :  { %3921 = vmatprep.mubr.msk.f32.mxu0 %vm1364_vm13, %v1092_v8 }
 0x376   :  { %v1093_v2 = vpop.trf.xlu0 }
 0x377   :  { %3922 = vmatmul.mubr.msk.f32.gmra.mrb[14].mxu0 %vm1364_vm13, %v1093_v2 }
 0x37a   :  { %v1124_v48 = vpop.trf.xlu0 }
 0x37b   :  { %3924 = vmatprep.mubr.msk.f32.mxu0 %vm1364_vm13, %v1124_v48 }
 0x37e   :  { %v1125_v43 = vpop.trf.xlu0 }
 0x37f   :  { %3925 = vmatmul.mubr.msk.f32.gmra.mrb[16].mxu0 %vm1364_vm13, %v1125_v43 }
 0x381   :  { %v3952_v42 = vpop.f32.mrb[8].mxu1 }
 0x382   :  { %v1156_v45 = vpop.trf.xlu0  ;;  %v2508_v61 = vpop.f32.mrb[9].mxu1 }
 0x383   :  { %3927 = vmatprep.mubr.msk.f32.mxu0 %vm1364_vm13, %v1156_v45 }
 0x385   :  { %v3955_v0 = vpop.f32.mrb[10].mxu1 }
 0x386   :  { %v1157_v49 = vpop.trf.xlu0  ;;  %v2518_v50 = vpop.f32.mrb[11].mxu1 }
 0x387   :  { %3928 = vmatmul.mubr.msk.f32.gmra.mrb[18].mxu0 %vm1364_vm13, %v1157_v49 }
 0x38a   :  { %v1188_v1 = vpop.trf.xlu0 }
 0x38b   :  { %3930 = vmatprep.mubr.msk.f32.mxu0 %vm1364_vm13, %v1188_v1  ;;  %v3958_v51 = vpop.f32.mrb[12].mxu1 }
 0x38c   :  { %v2528_v52 = vpop.f32.mrb[13].mxu1 }
 0x38e   :  { %v1189_v55 = vpop.trf.xlu0 }
 0x38f   :  { %3931 = vmatmul.mubr.msk.f32.gmra.mrb[20].mxu0 %vm1364_vm13, %v1189_v55  ;;  %v3961_v53 = vpop.f32.mrb[14].mxu1 }
 0x390   :  { %v2538_v18 = vpop.f32.mrb[15].mxu1 }
 0x392   :  { %v1220_v36 = vpop.trf.xlu0 }
 0x393   :  { %3933 = vmatprep.mubr.msk.f32.mxu0 %vm1364_vm13, %v1220_v36  ;;  %v3964_v46 = vpop.f32.mrb[16].mxu1 }
 0x394   :  { %v2548_v59 = vpop.f32.mrb[17].mxu1 }
 0x396   :  { %v1221_v54 = vpop.trf.xlu0 }
 0x397   :  { %3934 = vmatmul.mubr.msk.f32.gmra.mrb[22].mxu0 %vm1364_vm13, %v1221_v54  ;;  %v3967_v57 = vpop.f32.mrb[18].mxu1 }
 0x398   :  { %v2558_v3 = vpop.f32.mrb[19].mxu1 }
 0x39a   :  { %v1252_v4 = vpop.trf.xlu0 }
 0x39b   :  { %3936 = vmatprep.mubr.msk.f32.mxu0 %vm1364_vm13, %v1252_v4 }
 0x39e   :  { %v1253_v6 = vpop.trf.xlu0 }
 0x39f   :  { %3937 = vmatmul.mubr.msk.f32.gmra.mrb[24].mxu0 %vm1364_vm13, %v1253_v6 }
 0x3a0   :  { %3939 = vmatprep.mubr.msk.f32.mxu0 %vm1364_vm13, %v1284_v56 }
 0x3a2   :  { %v1316_v7 = vpop.trf.xlu0 }
 0x3a3   :  { %3940 = vmatmul.mubr.msk.f32.gmra.mrb[26].mxu0 %vm1364_vm13, %v1285_v5  ;;  %v3970_v13 = vpop.f32.mrb[20].mxu1  ;;  %v2848_v28 = vpop.permute.xlu1 %2847 }
 0x3a4   :  { %3942 = vmatprep.mubr.msk.f32.mxu0 %vm1364_vm13, %v1316_v7  ;;  %v2568_v14 = vpop.f32.mrb[21].mxu1 }
 0x3a6   :  { %v1317_v15 = vpop.trf.xlu0 }
 0x3a7   :  { %3943 = vmatmul.mubr.msk.f32.gmra.mrb[28].mxu0 %vm1364_vm13, %v1317_v15 }
 0x3a8   :  { %3945 = vmatprep.mubr.msk.f32.mxu0 %vm1364_vm13, %v1348_v9 }
 0x3aa   :  { %v4725_v17 = vpop.permute.xlu0 %594 }
 0x3ab   :  { %3946 = vmatmul.mubr.msk.f32.gmra.mrb[30].mxu0 %vm1364_vm13, %v1349_v16 }
 0x3ac   :  { %4006 = vmatprep.mubr.msk.bf16.mxu0 %vm4235_vm1, %v4234_v11 }
 0x3ae   :  { %v4729_v20 = vpop.permute.xlu0 %3430 }
 0x3c6   :  { %v2832_v40 = vpop.permute.xlu0 %2831 }
 0x3c7   :  { %v2879_v23 = vmul.f32 %v2832_v40, %v2508_v61  ;;  %v2880_v24 = vmul.f32 %v3952_v42, %v2832_v40 }
 0x3c8   :  { %v2834_v26 = vpop.permute.xlu1 %2833 }
 0x3c9   :  { %2917 = vrot.lane.b32.xlu1 %v2880_v24, %s4238_s1  ;;  %2915 = vrot.lane.b32.xlu0 %v2879_v23, %s4238_s1  ;;  %v2881_v58 = vmul.f32 %v2834_v26, %v2518_v50  ;;  %v2882_v31 = vmul.f32 %v3955_v0, %v2834_v26 }
 0x3ca   :  { %v2836_v21 = vpop.permute.xlu0 %2835 }
 0x3cb   :  { %v2883_v33 = vmul.f32 %v2836_v21, %v2528_v52  ;;  %v2884_v34 = vmul.f32 %v3958_v51, %v2836_v21 }
 0x3cc   :  { %v2850_v42 = vpop.permute.xlu1 %2849 }
 0x3cd   :  { %2949 = vrot.lane.b32.xlu1 %v2882_v31, %s4238_s1  ;;  %2947 = vrot.lane.b32.xlu0 %v2881_v58, %s4238_s1 }
 0x3ce   :  { %v2840_v32 = vpop.permute.xlu0 %2839 }
 0x3cf   :  { %v2887_v41 = vmul.f32 %v2840_v32, %v2548_v59  ;;  %v2888_v38 = vmul.f32 %v3964_v46, %v2840_v32 }
 0x3d1   :  { %2980 = vrot.lane.b32.xlu1 %v2884_v34, %s4238_s1  ;;  %2978 = vrot.lane.b32.xlu0 %v2883_v33, %s4238_s1 }
 0x3d2   :  { %v2838_v62 = vpop.permute.xlu0 %2837 }
 0x3d3   :  { %v2885_v44 = vmul.f32 %v2838_v62, %v2538_v18  ;;  %v2886_v35 = vmul.f32 %v3961_v53, %v2838_v62  ;;  %v2852_v53 = vpop.permute.xlu1 %2851 }
 0x3d5   :  { %3011 = vrot.lane.b32.xlu1 %v2886_v35, %s4238_s1  ;;  %3009 = vrot.lane.b32.xlu0 %v2885_v44, %s4238_s1 }
 0x3d6   :  { %v2842_v37 = vpop.permute.xlu0 %2841  ;;  %v3973_v39 = vpop.f32.mrb[22].mxu1 }
 0x3d7   :  { %v2578_v10 = vpop.f32.mrb[23].mxu1  ;;  %v2889_v2 = vmul.f32 %v2842_v37, %v2558_v3  ;;  %v2890_v48 = vmul.f32 %v3967_v57, %v2842_v37  ;;  %v2856_v54 = vpop.permute.xlu1 %2855 }
 0x3d9   :  { %3042 = vrot.lane.b32.xlu1 %v2888_v38, %s4238_s1  ;;  %3040 = vrot.lane.b32.xlu0 %v2887_v41, %s4238_s1 }
 0x3da   :  { %v2844_v22 = vpop.permute.xlu0 %2843  ;;  %v3976_v8 = vpop.f32.mrb[24].mxu1 }
 0x3db   :  { %v2588_v43 = vpop.f32.mrb[25].mxu1  ;;  %v2891_v61 = vmul.f32 %v2844_v22, %v2568_v14  ;;  %v2892_v0 = vmul.f32 %v3970_v13, %v2844_v22  ;;  %v2896_v36 = vmul.f32 %v3976_v8, %v2848_v28  ;;  %v2854_v15 = vpop.permute.xlu1 %2853  ;;  %v421_v8 = vrot.slane %v4651_v30, %v4628_v29 }
 0x3dc   :  { %v2895_v46 = vmul.f32 %v2848_v28, %v2588_v43 }
 0x3dd   :  { %3073 = vrot.lane.b32.xlu1 %v2890_v48, %s4238_s1  ;;  %3071 = vrot.lane.b32.xlu0 %v2889_v2, %s4238_s1  ;;  %v437_v2 = vrot.slane %v421_v8, %v4628_v29  ;;  %v429_v48 = vcombine.high %v421_v8, %v421_v8 }
 0x3de   :  { %v3979_v45 = vpop.f32.mrb[26].mxu1  ;;  %v2846_v50 = vpop.permute.xlu0 %2845 }
 0x3df   :  { %v2598_v49 = vpop.f32.mrb[27].mxu1  ;;  %v2893_v51 = vmul.f32 %v2846_v50, %v2578_v10  ;;  %v2894_v52 = vmul.f32 %v3973_v39, %v2846_v50  ;;  %v2898_v57 = vmul.f32 %v3979_v45, %v2850_v42  ;;  %v2858_v24 = vpop.permute.xlu1 %2857  ;;  %v515_v43 = vrot.slane %v437_v2, %v4501_v47 }
 0x3e0   :  { %v2897_v3 = vmul.f32 %v2850_v42, %v2598_v49  ;;  %v451_v42 = vrot.slane %v429_v48, %v4628_v29  ;;  %v414_v50 = vcombine.high %v4651_v30, %v4651_v30 }
 0x3e1   :  { %3104 = vrot.lane.b32.xlu1 %v2892_v0, %s4238_s1  ;;  %3102 = vrot.lane.b32.xlu0 %v2891_v61, %s4238_s1  ;;  %v601_v45 = vmul.f32 %v4727_v19, %v515_v43  ;;  %v600_v61 = vmul.f32 %v4725_v17, %v515_v43 }
 0x3e2   :  { %v3982_v1 = vpop.f32.mrb[28].mxu1  ;;  %v519_v0 = vrot.slane %v451_v42, %v4501_v47 }
 0x3e3   :  { %v2608_v55 = vpop.f32.mrb[29].mxu1  ;;  %v2900_v7 = vmul.f32 %v3982_v1, %v2852_v53  ;;  %v2860_v44 = vpop.permute.xlu1 %2859  ;;  %v634_v49 = vmul.f32 1.442695, %v601_v45  ;;  %v459_v1 = vcombine.high %v437_v2, %v437_v2 }
 0x3e4   :  { %v2899_v9 = vmul.f32 %v2852_v53, %v2608_v55  ;;  %v602_v55 = vmul.f32 %v4725_v17, %v519_v0  ;;  %v428_v53 = vrot.slane %v414_v50, %v4628_v29 }
 0x3e5   :  { %3135 = vrot.lane.b32.xlu1 %v2894_v52, %s4238_s1  ;;  %3133 = vrot.lane.b32.xlu0 %v2893_v51, %s4238_s1  ;;  %v632_v51 = vmul.f32 1.442695, %v600_v61  ;;  %v603_v52 = vmul.f32 %v4727_v19, %v519_v0  ;;  %4079 = vpow2.f32 %v634_v49 }
 0x3e6   :  { %v4747_v18 = vpop.f32.mrb[0].mxu0  ;;  %v430_v30 = vcombine.high %v428_v53, %v428_v53 }
 0x3e7   :  { %v4749_v59 = vpop.f32.mrb[1].mxu0  ;;  %v2862_v38 = vpop.permute.xlu1 %2861  ;;  %4081 = vpow2.f32 %v632_v51 }
 0x3e9   :  { %3166 = vrot.lane.b32.xlu1 %v2896_v36, %s4238_s1  ;;  %3164 = vrot.lane.b32.xlu0 %v2895_v46, %s4238_s1  ;;  %v461_v36 = vcombine.high %v451_v42, %v451_v42  ;;  %v523_v46 = vrot.slane %v459_v1, %v4501_v47 }
 0x3ea   :  { %v4753_v56 = vpop.f32.mrb[2].mxu0 }
 0x3eb   :  { %v4755_v4 = vpop.f32.mrb[3].mxu0 }
 0x3ed   :  { %3197 = vrot.lane.b32.xlu1 %v2898_v57, %s4238_s1  ;;  %3195 = vrot.lane.b32.xlu0 %v2897_v3, %s4238_s1  ;;  %v636_v57 = vmul.f32 1.442695, %v602_v55  ;;  %v605_v3 = vmul.f32 %v4727_v19, %v523_v46 }
 0x3ee   :  { %v4759_v5 = vpop.f32.mrb[4].mxu0  ;;  %v3985_v6 = vpop.f32.mrb[30].mxu1 }
 0x3ef   :  { %v4761_v13 = vpop.f32.mrb[5].mxu0  ;;  %v2618_v14 = vpop.f32.mrb[31].mxu1  ;;  %v2902_v28 = vmul.f32 %v3985_v6, %v2854_v15  ;;  %v604_v6 = vmul.f32 %v4725_v17, %v523_v46 }
 0x3f0   :  { %v2901_v40 = vmul.f32 %v2854_v15, %v2618_v14  ;;  %v642_v14 = vmul.f32 1.442695, %v605_v3 }
 0x3f1   :  { %3228 = vrot.lane.b32.xlu1 %v2900_v7, %s4238_s1  ;;  %3226 = vrot.lane.b32.xlu0 %v2899_v9, %s4238_s1  ;;  %v444_v7 = vrot.slane %v428_v53, %v4628_v29  ;;  %v527_v9 = vrot.slane %v461_v36, %v4501_v47 }
 0x3f2   :  { %v3988_v16 = vpop.f32.mrb[32].mxu1 }
 0x3f3   :  { %v2628_v23 = vpop.f32.mrb[33].mxu1  ;;  %v2904_v21 = vmul.f32 %v3988_v16, %v2856_v54  ;;  %v607_v15 = vmul.f32 %v4727_v19, %v527_v9  ;;  %v640_v16 = vmul.f32 1.442695, %v604_v6 }
 0x3f4   :  { %v2903_v58 = vmul.f32 %v2856_v54, %v2628_v23  ;;  %v638_v54 = vmul.f32 1.442695, %v603_v52  ;;  %v531_v23 = vrot.slane %v444_v7, %v4501_v47 }
 0x3f5   :  { %3259 = vrot.lane.b32.xlu1 %v2902_v28, %s4238_s1  ;;  %3257 = vrot.lane.b32.xlu0 %v2901_v40, %s4238_s1  ;;  %v606_v28 = vmul.f32 %v4725_v17, %v527_v9  ;;  %v458_v40 = vrot.slane %v430_v30, %v4628_v29 }
 0x3f6   :  { %v3991_v26 = vpop.f32.mrb[34].mxu1  ;;  %4083 = vpow2.f32 %v638_v54 }
 0x3f7   :  { %v2638_v31 = vpop.f32.mrb[35].mxu1  ;;  %v2906_v33 = vmul.f32 %v3991_v26, %v2858_v24  ;;  %4085 = vpow2.f32 %v636_v57  ;;  %v462_v61 = vcombine.high %v458_v40, %v458_v40 }
 0x3f8   :  { %v2905_v34 = vmul.f32 %v2858_v24, %v2638_v31  ;;  %v4080_v24 = vpop.eup %4079  ;;  %4087 = vpow2.f32 %v642_v14  ;;  %v644_v31 = vmul.f32 1.442695, %v606_v28 }
 0x3f9   :  { %3290 = vrot.lane.b32.xlu1 %v2904_v21, %s4238_s1  ;;  %3288 = vrot.lane.b32.xlu0 %v2903_v58, %s4238_s1  ;;  %v4082_v26 = vpop.eup %4081  ;;  %v646_v21 = vmul.f32 1.442695, %v607_v15  ;;  %v609_v58 = vmul.f32 %v4727_v19, %v531_v23  ;;  %4089 = vpow2.f32 %v640_v16  ;;  %v543_v9 = vrot.slane %v462_v61, %v4501_v47 }
 0x3fa   :  { %v3994_v32 = vpop.f32.mrb[36].mxu1 }
 0x3fb   :  { %v2648_v62 = vpop.f32.mrb[37].mxu1  ;;  %v2908_v37 = vmul.f32 %v3994_v32, %v2860_v44  ;;  %v608_v32 = vmul.f32 %v4725_v17, %v531_v23  ;;  %4091 = vpow2.f32 %v646_v21  ;;  %v615_v21 = vmul.f32 %v4727_v19, %v543_v9 }
 0x3fc   :  { %v2907_v39 = vmul.f32 %v2860_v44, %v2648_v62  ;;  %v470_v62 = vrot.slane %v4625_v63, %v4628_v29  ;;  %v2912_v44 = vmul.f32 0.0, %v4080_v24  ;;  %4093 = vpow2.f32 %v644_v31 }
 0x3fd   :  { %3321 = vrot.lane.b32.xlu1 %v2906_v33, %s4238_s1  ;;  %3319 = vrot.lane.b32.xlu0 %v2905_v34, %s4238_s1  ;;  %v460_v33 = vcombine.high %v444_v7, %v444_v7  ;;  %v535_v34 = vrot.slane %v458_v40, %v4501_v47  ;;  %v648_v42 = vmul.f32 1.442695, %v608_v32 }
 0x3fe   :  { %v3997_v35 = vpop.f32.mrb[38].mxu1  ;;  %v4814_v51 = vrot.slane %v470_v62, %v4628_v29  ;;  %v478_v30 = vcombine.high %v470_v62, %v470_v62 }
 0x3ff   :  { %v2658_v41 = vpop.f32.mrb[39].mxu1  ;;  %v2910_v10 = vmul.f32 %v3997_v35, %v2862_v38  ;;  %v2911_v35 = vmul.f32 0.0, %v4082_v26  ;;  %v539_v0 = vrot.slane %v460_v33, %v4501_v47  ;;  %v614_v33 = vmul.f32 %v4725_v17, %v543_v9 }
 0x400   :  { %v2909_v22 = vmul.f32 %v2862_v38, %v2658_v41  ;;  %v650_v38 = vmul.f32 1.442695, %v609_v58  ;;  %v4084_v8 = vpop.eup %4083  ;;  %v547_v28 = vrot.slane %v4814_v51, %v4501_v47  ;;  %v4832_v62 = vrot.slane %v478_v30, %v4628_v29 }
 0x401   :  { %3352 = vrot.lane.b32.xlu1 %v2908_v37, %s4238_s1  ;;  %3350 = vrot.lane.b32.xlu0 %v2907_v39, %s4238_s1  ;;  %v4086_v45 = vpop.eup %4085  ;;  %v613_v36 = vmul.f32 %v4727_v19, %v539_v0  ;;  %v612_v3 = vmul.f32 %v4725_v17, %v539_v0  ;;  %v660_v0 = vmul.f32 1.442695, %v614_v33 }
 0x402   :  { %4095 = vpow2.f32 %v650_v38  ;;  %v4088_v6 = vpop.eup %4087 }
 0x403   :  { %4097 = vpow2.f32 %v648_v42  ;;  %v4090_v14 = vpop.eup %4089  ;;  %v658_v24 = vmul.f32 1.442695, %v613_v36  ;;  %v656_v32 = vmul.f32 1.442695, %v612_v3  ;;  %v463_v42 = vcombine.high %v4625_v63, %v4625_v63 }
 0x405   :  { %3383 = vrot.lane.b32.xlu1 %v2910_v10, %s4238_s1  ;;  %3381 = vrot.lane.b32.xlu0 %v2909_v22, %s4238_s1  ;;  %v611_v10 = vmul.f32 %v4727_v19, %v535_v34  ;;  %v610_v22 = vmul.f32 %v4725_v17, %v535_v34  ;;  %v4092_v34 = vpop.eup %4091  ;;  %v477_v9 = vrot.slane %v463_v42, %v4628_v29 }
 0x407   :  { %v654_v53 = vmul.f32 1.442695, %v611_v10  ;;  %v652_v57 = vmul.f32 1.442695, %v610_v22  ;;  %v616_v10 = vmul.f32 %v4725_v17, %v547_v28 }
 0x409   :  { %4099 = vpow2.f32 %v654_v53  ;;  %v508_v53 = vcombine.high %v4814_v51, %v4814_v51 }
 0x40a   :  { %4101 = vpow2.f32 %v652_v57  ;;  %v664_v57 = vmul.f32 1.442695, %v616_v10  ;;  %v479_v10 = vcombine.high %v477_v9, %v477_v9 }
 0x40b   :  { %4103 = vpow2.f32 %v658_v24  ;;  %v555_v24 = vrot.slane %v508_v53, %v4501_v47 }
 0x40c   :  { %4105 = vpow2.f32 %v656_v32 }
 0x43a   :  { %v4802_v37 = vpop.f32.mrb[6].mxu0 }
 0x43b   :  { %v2918_v39 = vpop.permute.xlu1 %2917  ;;  %v2916_v41 = vpop.permute.xlu0 %2915 }
 0x43c   :  { %v2922_v2 = vadd.f32 %v2918_v39, %v2912_v44  ;;  %v2921_v48 = vadd.f32 %v2916_v41, %v2911_v35  ;;  %v4806_v43 = vpop.f32.mrb[7].mxu0  ;;  %v617_v35 = vmul.f32 %v4727_v19, %v547_v28  ;;  %v4094_v39 = vpop.eup %4093 }
 0x43e   :  { %v4809_v49 = vpop.f32.mrb[8].mxu0  ;;  %2925 = vrot.lane.b32.xlu1 %v2921_v48, %s4238_s1  ;;  %2927 = vrot.lane.b32.xlu0 %v2922_v2, %s4238_s1  ;;  %v2944_v50 = vmul.f32 %v4084_v8, %v2922_v2  ;;  %v2943_v1 = vmul.f32 %v4086_v45, %v2921_v48  ;;  %v662_v2 = vmul.f32 1.442695, %v615_v21  ;;  %v666_v36 = vmul.f32 1.442695, %v617_v35 }
 0x43f   :  { %v4816_v52 = vpop.f32.mrb[9].mxu0  ;;  %v2950_v55 = vpop.permute.xlu1 %2949 }
 0x440   :  { %v2954_v46 = vadd.f32 %v2950_v55, %v2944_v50  ;;  %v2948_v54 = vpop.permute.xlu0 %2947  ;;  %v4096_v50 = vpop.eup %4095  ;;  %4107 = vpow2.f32 %v662_v2 }
 0x441   :  { %v2953_v7 = vadd.f32 %v2948_v54, %v2943_v1  ;;  %v551_v1 = vrot.slane %v4832_v62, %v4501_v47  ;;  %4109 = vpow2.f32 %v660_v0 }
 0x442   :  { %2959 = vrot.lane.b32.xlu0 %v2954_v46, %s4238_s1  ;;  %v2975_v15 = vmul.f32 %v4088_v6, %v2954_v46  ;;  %v4822_v16 = vpop.f32.mrb[10].mxu0  ;;  %v4098_v46 = vpop.eup %4097  ;;  %4111 = vpow2.f32 %v666_v36 }
 0x443   :  { %2957 = vrot.lane.b32.xlu1 %v2953_v7, %s4238_s1  ;;  %v2981_v40 = vpop.permute.xlu1 %2980  ;;  %v2974_v23 = vmul.f32 %v4090_v14, %v2953_v7  ;;  %v4827_v26 = vpop.f32.mrb[11].mxu0  ;;  %v619_v7 = vmul.f32 %v4727_v19, %v551_v1  ;;  %4113 = vpow2.f32 %v664_v57 }
 0x444   :  { %v2985_v58 = vadd.f32 %v2981_v40, %v2975_v15  ;;  %v2979_v31 = vpop.permute.xlu0 %2978  ;;  %v618_v15 = vmul.f32 %v4725_v17, %v551_v1  ;;  %v4100_v28 = vpop.eup %4099  ;;  %v510_v40 = vcombine.high %v4832_v62, %v4832_v62  ;;  %v620_v62 = vmul.f32 %v4725_v17, %v555_v24 }
 0x445   :  { %v2984_v44 = vadd.f32 %v2979_v31, %v2974_v23  ;;  %v4102_v21 = vpop.eup %4101  ;;  %v670_v33 = vmul.f32 1.442695, %v619_v7 }
 0x446   :  { %2990 = vrot.lane.b32.xlu0 %v2985_v58, %s4238_s1  ;;  %v3006_v41 = vmul.f32 %v4092_v34, %v2985_v58  ;;  %v4836_v38 = vpop.f32.mrb[12].mxu0  ;;  %v621_v34 = vmul.f32 %v4727_v19, %v555_v24  ;;  %v559_v2 = vrot.slane %v510_v40, %v4501_v47 }
 0x447   :  { %2988 = vrot.lane.b32.xlu1 %v2984_v44, %s4238_s1  ;;  %v3012_v22 = vpop.permute.xlu1 %3011  ;;  %v3005_v8 = vmul.f32 %v4094_v39, %v2984_v44  ;;  %v4840_v48 = vpop.f32.mrb[13].mxu0  ;;  %v668_v39 = vmul.f32 1.442695, %v618_v15  ;;  %4115 = vpow2.f32 %v670_v33 }
 0x448   :  { %v3016_v45 = vadd.f32 %v3012_v22, %v3006_v41  ;;  %v3010_v61 = vpop.permute.xlu0 %3009  ;;  %v4104_v41 = vpop.eup %4103  ;;  %v4865_v22 = vrot.slane %v477_v9, %v4628_v29  ;;  %v674_v1 = vmul.f32 1.442695, %v621_v34  ;;  %v623_v53 = vmul.f32 %v4727_v19, %v559_v2 }
 0x449   :  { %v3015_v55 = vadd.f32 %v3010_v61, %v3005_v8  ;;  %v4106_v42 = vpop.eup %4105  ;;  %4117 = vpow2.f32 %v668_v39  ;;  %v622_v57 = vmul.f32 %v4725_v17, %v559_v2 }
 0x44a   :  { %3021 = vrot.lane.b32.xlu0 %v3016_v45, %s4238_s1  ;;  %v3037_v54 = vmul.f32 %v4096_v50, %v3016_v45  ;;  %v4849_v3 = vpop.f32.mrb[14].mxu0  ;;  %v563_v7 = vrot.slane %v4865_v22, %v4501_v47  ;;  %4119 = vpow2.f32 %v674_v1  ;;  %v678_v24 = vmul.f32 1.442695, %v623_v53 }
 0x44b   :  { %3019 = vrot.lane.b32.xlu1 %v3015_v55, %s4238_s1  ;;  %v3043_v63 = vpop.permute.xlu1 %3042  ;;  %v3036_v6 = vmul.f32 %v4098_v46, %v3015_v55  ;;  %v4852_v30 = vpop.f32.mrb[15].mxu0  ;;  %v509_v34 = vcombine.high %v4865_v22, %v4865_v22 }
 0x44c   :  { %v3047_v51 = vadd.f32 %v3043_v63, %v3037_v54  ;;  %v3041_v14 = vpop.permute.xlu0 %3040  ;;  %v672_v54 = vmul.f32 1.442695, %v620_v62  ;;  %v4108_v63 = vpop.eup %4107  ;;  %v624_v33 = vmul.f32 %v4725_v17, %v563_v7 }
 0x44d   :  { %v3046_v23 = vadd.f32 %v3041_v14, %v3036_v6  ;;  %v507_v6 = vrot.slane %v479_v10, %v4628_v29  ;;  %v4110_v14 = vpop.eup %4109  ;;  %v625_v29 = vmul.f32 %v4727_v19, %v563_v7 }
 0x44e   :  { %3052 = vrot.lane.b32.xlu0 %v3047_v51, %s4238_s1  ;;  %v3068_v58 = vmul.f32 %v4100_v28, %v3047_v51  ;;  %v4053_v51 = vld [vmem:[%s5111_s4] sm:$0xff]   ;;  %v4112_v28 = vpop.eup %4111  ;;  %4121 = vpow2.f32 %v672_v54 }
 0x44f   :  { %3050 = vrot.lane.b32.xlu1 %v3046_v23, %s4238_s1  ;;  %v3074_v31 = vpop.permute.xlu1 %3073  ;;  %v3067_v32 = vmul.f32 %v4102_v21, %v3046_v23  ;;  %3999 = vmatpush3.bf16.msra.mxu0 %v4053_v51  ;;  %v4114_v21 = vpop.eup %4113  ;;  %v3161_v39 = vmul.f32 0.0, %v4112_v28  ;;  %4123 = vpow2.f32 %v678_v24  ;;  %v511_v53 = vcombine.high %v507_v6, %v507_v6 }
 0x450   :  { %v3078_v44 = vadd.f32 %v3074_v31, %v3068_v58  ;;  %v3072_v35 = vpop.permute.xlu0 %3071  ;;  %4000 = vmatprep.subr.bf16.mxu0 %v4234_v11  ;;  %v3160_v10 = vmul.f32 0.0, %v4114_v21 }
 0x451   :  { %v3077_v8 = vadd.f32 %v3072_v35, %v3067_v32  ;;  %v676_v32 = vmul.f32 1.442695, %v622_v57  ;;  %v567_v35 = vrot.slane %v507_v6, %v4501_v47  ;;  %v4116_v1 = vpop.eup %4115  ;;  %v575_v24 = vrot.slane %v511_v53, %v4501_v47 }
 0x452   :  { %3083 = vrot.lane.b32.xlu0 %v3078_v44, %s4238_s1  ;;  %v3099_v45 = vmul.f32 %v4104_v41, %v3078_v44  ;;  %v4869_v61 = vpop.f32.mrb[16].mxu0 }
 0x453   :  { %3081 = vrot.lane.b32.xlu1 %v3077_v8, %s4238_s1  ;;  %v3105_v0 = vpop.permute.xlu1 %3104  ;;  %v3098_v50 = vmul.f32 %v4106_v42, %v3077_v8  ;;  %v4872_v55 = vpop.f32.mrb[17].mxu0  ;;  %v682_v8 = vmul.f32 1.442695, %v625_v29  ;;  %v627_v42 = vmul.f32 %v4727_v19, %v567_v35  ;;  %4125 = vpow2.f32 %v676_v32 }
 0x454   :  { %v3109_v36 = vadd.f32 %v3105_v0, %v3099_v45  ;;  %v3103_v46 = vpop.permute.xlu0 %3102  ;;  %v680_v0 = vmul.f32 1.442695, %v624_v33  ;;  %v4118_v54 = vpop.eup %4117 }
 0x455   :  { %v3108_v9 = vadd.f32 %v3103_v46, %v3098_v50  ;;  %v626_v50 = vmul.f32 %v4725_v17, %v567_v35  ;;  %v571_v46 = vrot.slane %v509_v34, %v4501_v47  ;;  %4127 = vpow2.f32 %v682_v8 }
 0x456   :  { %3114 = vrot.lane.b32.xlu0 %v3109_v36, %s4238_s1  ;;  %v3130_v15 = vmul.f32 %v4108_v63, %v3109_v36  ;;  %4129 = vpow2.f32 %v680_v0 }
 0x457   :  { %3112 = vrot.lane.b32.xlu1 %v3108_v9, %s4238_s1  ;;  %v3136_v40 = vpop.permute.xlu1 %3135  ;;  %v3129_v23 = vmul.f32 %v4110_v14, %v3108_v9  ;;  %v686_v9 = vmul.f32 1.442695, %v627_v42  ;;  %v629_v51 = vmul.f32 %v4727_v19, %v571_v46  ;;  %v684_v28 = vmul.f32 1.442695, %v626_v50 }
 0x458   :  { %v3140_v58 = vadd.f32 %v3136_v40, %v3130_v15  ;;  %v3134_v31 = vpop.permute.xlu0 %3133  ;;  %v628_v6 = vmul.f32 %v4725_v17, %v571_v46  ;;  %v4120_v40 = vpop.eup %4119 }
 0x459   :  { %v3139_v44 = vadd.f32 %v3134_v31, %v3129_v23  ;;  %v4122_v29 = vpop.eup %4121  ;;  %4131 = vpow2.f32 %v686_v9  ;;  %v690_v33 = vmul.f32 1.442695, %v629_v51 }
 0x45a   :  { %3145 = vrot.lane.b32.xlu0 %v3140_v58, %s4238_s1  ;;  %v4891_v62 = vpop.f32.mrb[18].mxu0  ;;  %4133 = vpow2.f32 %v684_v28  ;;  %v688_v47 = vmul.f32 1.442695, %v628_v6 }
 0x45b   :  { %3143 = vrot.lane.b32.xlu1 %v3139_v44, %s4238_s1  ;;  %v3167_v41 = vpop.permute.xlu1 %3166  ;;  %v4894_v2 = vpop.f32.mrb[19].mxu0  ;;  %v631_v44 = vmul.f32 %v4727_v19, %v575_v24  ;;  %4135 = vpow2.f32 %v690_v33  ;;  %v4054_v19 = vld [vmem:[%s5111_s4 + $0x8] sm:$0xff]  }
 0x45c   :  { %v3171_v45 = vadd.f32 %v3167_v41, %v3161_v39  ;;  %v3165_v22 = vpop.permute.xlu0 %3164  ;;  %v630_v41 = vmul.f32 %v4725_v17, %v575_v24  ;;  %4137 = vpow2.f32 %v688_v47  ;;  %4001 = vmatpush3.bf16.msra.mxu0 %v4054_v19 }
 0x45d   :  { %v3170_v36 = vadd.f32 %v3165_v22, %v3160_v10  ;;  %v4124_v10 = vpop.eup %4123  ;;  %v694_v50 = vmul.f32 1.442695, %v631_v44  ;;  %4002 = vmatprep.subr.bf16.mxu0 %v4234_v11 }
 0x45e   :  { %3176 = vrot.lane.b32.xlu0 %v3171_v45, %s4238_s1  ;;  %v3192_v57 = vmul.f32 %v4116_v1, %v3171_v45  ;;  %v4126_v42 = vpop.eup %4125  ;;  %v692_v17 = vmul.f32 1.442695, %v630_v41 }
 0x45f   :  { %3174 = vrot.lane.b32.xlu1 %v3170_v36, %s4238_s1  ;;  %v3198_v63 = vpop.permute.xlu1 %3197  ;;  %v3191_v7 = vmul.f32 %v4118_v54, %v3170_v36  ;;  %v4128_v36 = vpop.eup %4127  ;;  %4139 = vpow2.f32 %v694_v50 }
 0x460   :  { %v3202_v14 = vadd.f32 %v3198_v63, %v3192_v57  ;;  %v3196_v15 = vpop.permute.xlu0 %3195  ;;  %v4130_v54 = vpop.eup %4129  ;;  %4141 = vpow2.f32 %v692_v17 }
 0x461   :  { %v3201_v23 = vadd.f32 %v3196_v15, %v3191_v7 }
 0x462   :  { %3207 = vrot.lane.b32.xlu0 %v3202_v14, %s4238_s1  ;;  %v3223_v21 = vmul.f32 %v4120_v40, %v3202_v14  ;;  %v4905_v58 = vpop.f32.mrb[20].mxu0 }
 0x463   :  { %3205 = vrot.lane.b32.xlu1 %v3201_v23, %s4238_s1  ;;  %v3229_v31 = vpop.permute.xlu1 %3228  ;;  %v3222_v32 = vmul.f32 %v4122_v29, %v3201_v23  ;;  %v4908_v34 = vpop.f32.mrb[21].mxu0 }
 0x464   :  { %v3233_v35 = vadd.f32 %v3229_v31, %v3223_v21  ;;  %v3227_v39 = vpop.permute.xlu0 %3226  ;;  %v4132_v28 = vpop.eup %4131 }
 0x465   :  { %v3232_v8 = vadd.f32 %v3227_v39, %v3222_v32  ;;  %v4134_v40 = vpop.eup %4133 }
 0x466   :  { %3238 = vrot.lane.b32.xlu0 %v3233_v35, %s4238_s1  ;;  %v3254_v45 = vmul.f32 %v4124_v10, %v3233_v35  ;;  %v4136_v32 = vpop.eup %4135 }
 0x467   :  { %3236 = vrot.lane.b32.xlu1 %v3232_v8, %s4238_s1  ;;  %v3260_v22 = vpop.permute.xlu1 %3259  ;;  %v3253_v0 = vmul.f32 %v4126_v42, %v3232_v8  ;;  %v4138_v44 = vpop.eup %4137 }
 0x468   :  { %v3264_v1 = vadd.f32 %v3260_v22, %v3254_v45  ;;  %v3258_v53 = vpop.permute.xlu0 %3257 }
 0x469   :  { %v3263_v46 = vadd.f32 %v3258_v53, %v3253_v0  ;;  %v4140_v45 = vpop.eup %4139  ;;  %v4055_v0 = vld [vmem:[%s5111_s4 + $0x10] sm:$0xff]  }
 0x46a   :  { %3269 = vrot.lane.b32.xlu0 %v3264_v1, %s4238_s1  ;;  %v3285_v57 = vmul.f32 %v4128_v36, %v3264_v1  ;;  %v4918_v63 = vpop.f32.mrb[22].mxu0  ;;  %v4142_v50 = vpop.eup %4141  ;;  %4003 = vmatpush3.bf16.msra.mxu0 %v4055_v0 }
 0x46b   :  { %3267 = vrot.lane.b32.xlu1 %v3263_v46, %s4238_s1  ;;  %v3291_v7 = vpop.permute.xlu1 %3290  ;;  %v3284_v9 = vmul.f32 %v4130_v54, %v3263_v46  ;;  %v4922_v51 = vpop.f32.mrb[23].mxu0  ;;  %4004 = vmatprep.subr.bf16.mxu0 %v4234_v11 }
 0x46c   :  { %v3295_v14 = vadd.f32 %v3291_v7, %v3285_v57  ;;  %v3289_v15 = vpop.permute.xlu0 %3288 }
 0x46d   :  { %v3294_v6 = vadd.f32 %v3289_v15, %v3284_v9  ;;  %v3433_v15 = vmul.f32 %v4729_v20, %v4649_v12 }
 0x46e   :  { %3300 = vrot.lane.b32.xlu0 %v3295_v14, %s4238_s1  ;;  %v3316_v23 = vmul.f32 %v4132_v28, %v3295_v14  ;;  %v3434_v14 = vmul.f32 %v4729_v20, %v4621_v60 }
 0x46f   :  { %3298 = vrot.lane.b32.xlu1 %v3294_v6, %s4238_s1  ;;  %v3322_v24 = vpop.permute.xlu1 %3321  ;;  %v3315_v29 = vmul.f32 %v4134_v40, %v3294_v6  ;;  %v4056_v40 = vld [vmem:[%s5111_s4 + $0x18] sm:$0xff]  }
 0x470   :  { %v3326_v21 = vadd.f32 %v3322_v24, %v3316_v23  ;;  %v3320_v31 = vpop.permute.xlu0 %3319  ;;  %4005 = vmatpush3.bf16.msra.mxu0 %v4056_v40 }
 0x471   :  { %v3325_v33 = vadd.f32 %v3320_v31, %v3315_v29  ;;  %4018 = vmatprep.subr.bf16.mxu0 %v4234_v11 }
 0x472   :  { %3331 = vrot.lane.b32.xlu0 %v3326_v21, %s4238_s1  ;;  %v3347_v35 = vmul.f32 %v4136_v32, %v3326_v21  ;;  %v4927_v39 = vpop.f32.mrb[24].mxu0 }
 0x473   :  { %3329 = vrot.lane.b32.xlu1 %v3325_v33, %s4238_s1  ;;  %v3353_v47 = vpop.permute.xlu1 %3352  ;;  %v3346_v41 = vmul.f32 %v4138_v44, %v3325_v33  ;;  %v4930_v10 = vpop.f32.mrb[25].mxu0 }
 0x474   :  { %v3357_v8 = vadd.f32 %v3353_v47, %v3347_v35  ;;  %v3351_v42 = vpop.permute.xlu0 %3350 }
 0x475   :  { %v3356_v22 = vadd.f32 %v3351_v42, %v3346_v41 }
 0x476   :  { %3362 = vrot.lane.b32.xlu0 %v3357_v8, %s4238_s1  ;;  %v3378_v19 = vmul.f32 %v4140_v45, %v3357_v8  ;;  %v4936_v1 = vpop.f32.mrb[26].mxu0 }
 0x477   :  { %3360 = vrot.lane.b32.xlu1 %v3356_v22, %s4238_s1  ;;  %v3384_v53 = vpop.permute.xlu1 %3383  ;;  %v3377_v17 = vmul.f32 %v4142_v50, %v3356_v22  ;;  %v4939_v36 = vpop.f32.mrb[27].mxu0 }
 0x478   :  { %v3388_v46 = vadd.f32 %v3384_v53, %v3378_v19  ;;  %v3382_v54 = vpop.permute.xlu0 %3381 }
 0x479   :  { %v3387_v57 = vadd.f32 %v3382_v54, %v3377_v17 }
 0x47a   :  { %3393 = vrot.lane.b32.xlu0 %v3388_v46, %s4238_s1  ;;  %v4943_v7 = vpop.f32.mrb[28].mxu0 }
 0x47b   :  { %3391 = vrot.lane.b32.xlu1 %v3387_v57, %s4238_s1  ;;  %v4946_v9 = vpop.f32.mrb[29].mxu0 }
 0x47e   :  { %3439 = vrot.lane.b32.xlu0 %v3434_v14, %s4238_s1  ;;  %v4953_v28 = vpop.f32.mrb[30].mxu0 }
 0x47f   :  { %3437 = vrot.lane.b32.xlu1 %v3433_v15, %s4238_s1  ;;  %v4956_v6 = vpop.f32.mrb[31].mxu0 }
 0x4b0   :  { %v2926_v60 = vpop.permute.xlu1 %2925  ;;  %v2928_v23 = vpop.permute.xlu0 %2927 }
 0x4b1   :  { %v2931_v12 = vmul.f32 %v2926_v60, %v4749_v59  ;;  %v2932_v20 = vmul.f32 %v4747_v18, %v2928_v23 }
 0x4b3   :  { %v2934_v24 = vsel %vm2933_vm5, %v2931_v12, 0.0  ;;  %v2935_v29 = vsel %vm2933_vm5, %v2932_v20, 0.0 }
 0x4b4   :  { %v2936_v21 = vadd.f32 %v2935_v29, %v2934_v24  ;;  %v2960_v31 = vpop.permute.xlu0 %2959 }
 0x4b5   :  { %v2958_v32 = vpop.permute.xlu1 %2957  ;;  %v2964_v33 = vmul.f32 %v4753_v56, %v2960_v31 }
 0x4b6   :  { %v2937_v44 = vrot.slane %v2936_v21, 4  ;;  %v2963_v35 = vmul.f32 %v2958_v32, %v4755_v4 }
 0x4b7   :  { %v2966_v47 = vsel %vm2933_vm5, %v2964_v33, 0.0 }
 0x4b8   :  { %v2938_v41 = vadd.f32 %v2937_v44, %v2936_v21  ;;  %v2965_v8 = vsel %vm2933_vm5, %v2963_v35, 0.0  ;;  %v2991_v59 = vpop.permute.xlu0 %2990 }
 0x4b9   :  { %v2967_v42 = vadd.f32 %v2966_v47, %v2965_v8  ;;  %v2989_v18 = vpop.permute.xlu1 %2988  ;;  %v2995_v45 = vmul.f32 %v4759_v5, %v2991_v59 }
 0x4ba   :  { %v2939_v22 = vrot.slane %v2938_v41, 2  ;;  %v2994_v0 = vmul.f32 %v2989_v18, %v4761_v13 }
 0x4bb   :  { %v2968_v50 = vrot.slane %v2967_v42, 4  ;;  %v2997_v19 = vsel %vm2933_vm5, %v2995_v45, 0.0 }
 0x4bc   :  { %v2940_v56 = vadd.f32 %v2939_v22, %v2938_v41  ;;  %v2996_v53 = vsel %vm2933_vm5, %v2994_v0, 0.0  ;;  %v3022_v4 = vpop.permute.xlu0 %3021 }
 0x4bd   :  { %v2969_v17 = vadd.f32 %v2968_v50, %v2967_v42  ;;  %v2998_v46 = vadd.f32 %v2997_v19, %v2996_v53  ;;  %v3020_v54 = vpop.permute.xlu1 %3019  ;;  %v3026_v57 = vmul.f32 %v4802_v37, %v3022_v4 }
 0x4be   :  { %v3025_v14 = vmul.f32 %v3020_v54, %v4806_v43  ;;  %v2941_v60 = vrot.slane %v2940_v56, 1 }
 0x4bf   :  { %v2970_v15 = vrot.slane %v2969_v17, 2  ;;  %v2999_v40 = vrot.slane %v2998_v46, 4  ;;  %v3028_v5 = vsel %vm2933_vm5, %v3026_v57, 0.0 }
 0x4c0   :  { %v3027_v13 = vsel %vm2933_vm5, %v3025_v14, 0.0  ;;  %v3053_v23 = vpop.permute.xlu0 %3052  ;;  %v2942_v44 = vadd.f32 %v2941_v60, %v2940_v56 }
 0x4c1   :  { %v2971_v12 = vadd.f32 %v2970_v15, %v2969_v17  ;;  %v3000_v20 = vadd.f32 %v2999_v40, %v2998_v46  ;;  %v3029_v24 = vadd.f32 %v3028_v5, %v3027_v13  ;;  %v3051_v29 = vpop.permute.xlu1 %3050  ;;  %v3057_v21 = vmul.f32 %v4809_v49, %v3053_v23 }
 0x4c2   :  { %v3056_v31 = vmul.f32 %v3051_v29, %v4816_v52 }
 0x4c3   :  { %v2972_v32 = vrot.slane %v2971_v12, 1  ;;  %v3001_v37 = vrot.slane %v3000_v20, 2  ;;  %v3030_v33 = vrot.slane %v3029_v24, 4  ;;  %v3059_v43 = vsel %vm2933_vm5, %v3057_v21, 0.0 }
 0x4c4   :  { %v3058_v35 = vsel %vm2933_vm5, %v3056_v31, 0.0  ;;  %v3084_v47 = vpop.permute.xlu0 %3083 }
 0x4c5   :  { %v2973_v41 = vadd.f32 %v2972_v32, %v2971_v12  ;;  %v3002_v8 = vadd.f32 %v3001_v37, %v3000_v20  ;;  %v3031_v59 = vadd.f32 %v3030_v33, %v3029_v24  ;;  %v3060_v42 = vadd.f32 %v3059_v43, %v3058_v35  ;;  %v3082_v18 = vpop.permute.xlu1 %3081 }
 0x4c6   :  { %v3087_v45 = vmul.f32 %v3082_v18, %v4827_v26  ;;  %v3088_v49 = vmul.f32 %v4822_v16, %v3084_v47 }
 0x4c7   :  { %v3408_v52 = vsel %vm269_vm3, %v2942_v44, %v2973_v41  ;;  %v3003_v22 = vrot.slane %v3002_v8, 1  ;;  %v3032_v0 = vrot.slane %v3031_v59, 2  ;;  %v3061_v50 = vrot.slane %v3060_v42, 4 }
 0x4c8   :  { %v3089_v19 = vsel %vm2933_vm5, %v3087_v45, 0.0  ;;  %v3090_v56 = vsel %vm2933_vm5, %v3088_v49, 0.0  ;;  %v3115_v53 = vpop.permute.xlu0 %3114 }
 0x4c9   :  { %v3004_v4 = vadd.f32 %v3003_v22, %v3002_v8  ;;  %v3033_v17 = vadd.f32 %v3032_v0, %v3031_v59  ;;  %v3062_v46 = vadd.f32 %v3061_v50, %v3060_v42  ;;  %v3091_v54 = vadd.f32 %v3090_v56, %v3089_v19  ;;  %v3113_v57 = vpop.permute.xlu1 %3112 }
 0x4ca   :  { %v3118_v14 = vmul.f32 %v3113_v57, %v4840_v48  ;;  %v3119_v26 = vmul.f32 %v4836_v38, %v3115_v53 }
 0x4cb   :  { %v3034_v16 = vrot.slane %v3033_v17, 1  ;;  %v3063_v15 = vrot.slane %v3062_v46, 2  ;;  %v3092_v40 = vrot.slane %v3091_v54, 4  ;;  %v3409_v5 = vsel %vm304_vm4, %v3408_v52, %v3004_v4 }
 0x4cc   :  { %v3120_v60 = vsel %vm2933_vm5, %v3118_v14, 0.0  ;;  %v3121_v13 = vsel %vm2933_vm5, %v3119_v26, 0.0  ;;  %v3146_v23 = vpop.permute.xlu0 %3145 }
 0x4cd   :  { %v3035_v12 = vadd.f32 %v3034_v16, %v3033_v17  ;;  %v3064_v20 = vadd.f32 %v3063_v15, %v3062_v46  ;;  %v3093_v24 = vadd.f32 %v3092_v40, %v3091_v54  ;;  %v3122_v29 = vadd.f32 %v3121_v13, %v3120_v60  ;;  %v3144_v21 = vpop.permute.xlu1 %3143 }
 0x4ce   :  { %v3149_v31 = vmul.f32 %v3144_v21, %v4852_v30  ;;  %v3150_v48 = vmul.f32 %v4849_v3, %v3146_v23  ;;  %v402_v40 = vmul.f32 0.5, %v4337_v25 }
 0x4cf   :  { %v3065_v38 = vrot.slane %v3064_v20, 1  ;;  %v3094_v32 = vrot.slane %v3093_v24, 2  ;;  %v3123_v37 = vrot.slane %v3122_v29, 4  ;;  %v3410_v33 = vsel %vm339_vm2, %v3409_v5, %v3035_v12 }
 0x4d0   :  { %v3151_v43 = vsel %vm2933_vm5, %v3149_v31, 0.0  ;;  %v3152_v44 = vsel %vm2933_vm5, %v3150_v48, 0.0  ;;  %v3177_v35 = vpop.permute.xlu0 %3176  ;;  %4143 = vtanh.f32 %v402_v40 }
 0x4d1   :  { %v3066_v47 = vadd.f32 %v3065_v38, %v3064_v20  ;;  %v3095_v41 = vadd.f32 %v3094_v32, %v3093_v24  ;;  %v3124_v8 = vadd.f32 %v3123_v37, %v3122_v29  ;;  %v3153_v59 = vadd.f32 %v3152_v44, %v3151_v43  ;;  %v3175_v42 = vpop.permute.xlu1 %3174 }
 0x4d2   :  { %v3180_v18 = vmul.f32 %v3175_v42, %v4872_v55  ;;  %v3181_v30 = vmul.f32 %v4869_v61, %v3177_v35 }
 0x4d3   :  { %v3096_v3 = vrot.slane %v3095_v41, 1  ;;  %v3125_v45 = vrot.slane %v3124_v8, 2  ;;  %v3154_v49 = vrot.slane %v3153_v59, 4  ;;  %v3411_v52 = vsel %vm1461_vm10, %v3410_v33, %v3066_v47 }
 0x4d4   :  { %v3182_v22 = vsel %vm2933_vm5, %v3180_v18, 0.0  ;;  %v3183_v0 = vsel %vm2933_vm5, %v3181_v30, 0.0  ;;  %v3208_v50 = vpop.permute.xlu0 %3207 }
 0x4d5   :  { %v3097_v19 = vadd.f32 %v3096_v3, %v3095_v41  ;;  %v3126_v56 = vadd.f32 %v3125_v45, %v3124_v8  ;;  %v3155_v53 = vadd.f32 %v3154_v49, %v3153_v59  ;;  %v3184_v4 = vadd.f32 %v3183_v0, %v3182_v22  ;;  %v3206_v17 = vpop.permute.xlu1 %3205 }
 0x4d6   :  { %v3211_v55 = vmul.f32 %v3206_v17, %v4894_v2  ;;  %v3212_v61 = vmul.f32 %v4891_v62, %v3208_v50 }
 0x4d7   :  { %v3127_v46 = vrot.slane %v3126_v56, 1  ;;  %v3156_v54 = vrot.slane %v3155_v53, 2  ;;  %v3185_v57 = vrot.slane %v3184_v4, 4  ;;  %v3413_v14 = vsel %vm3412_vm6, %v3411_v52, %v3097_v19 }
 0x4d8   :  { %v3213_v26 = vsel %vm2933_vm5, %v3211_v55, 0.0  ;;  %v3214_v16 = vsel %vm2933_vm5, %v3212_v61, 0.0  ;;  %v3239_v15 = vpop.permute.xlu0 %3238 }
 0x4d9   :  { %v3157_v5 = vadd.f32 %v3156_v54, %v3155_v53  ;;  %v3186_v60 = vadd.f32 %v3185_v57, %v3184_v4  ;;  %v3215_v13 = vadd.f32 %v3214_v16, %v3213_v26  ;;  %v3237_v23 = vpop.permute.xlu1 %3236  ;;  %v3243_v2 = vmul.f32 %v4905_v58, %v3239_v15 }
 0x4da   :  { %v3242_v62 = vmul.f32 %v3237_v23, %v4908_v34  ;;  %v3128_v12 = vadd.f32 %v3127_v46, %v3126_v56  ;;  %v4144_v54 = vpop.eup %4143 }
 0x4db   :  { %v3187_v20 = vrot.slane %v3186_v60, 2  ;;  %v3216_v24 = vrot.slane %v3215_v13, 4  ;;  %v3245_v29 = vsel %vm2933_vm5, %v3243_v2, 0.0  ;;  %v3158_v21 = vrot.slane %v3157_v5, 1 }
 0x4dc   :  { %v3244_v31 = vsel %vm2933_vm5, %v3242_v62, 0.0  ;;  %v3270_v48 = vpop.permute.xlu0 %3269  ;;  %v3415_v38 = vsel %vm3414_vm7, %v3413_v14, %v3128_v12 }
 0x4dd   :  { %v3188_v32 = vadd.f32 %v3187_v20, %v3186_v60  ;;  %v3217_v37 = vadd.f32 %v3216_v24, %v3215_v13  ;;  %v3246_v33 = vadd.f32 %v3245_v29, %v3244_v31  ;;  %v3268_v43 = vpop.permute.xlu1 %3267  ;;  %v3274_v58 = vmul.f32 %v4918_v63, %v3270_v48 }
 0x4de   :  { %v3273_v34 = vmul.f32 %v3268_v43, %v4922_v51  ;;  %v3159_v44 = vadd.f32 %v3158_v21, %v3157_v5  ;;  %v406_v20 = vadd.f32 1.0, %v4144_v54 }
 0x4df   :  { %v3218_v35 = vrot.slane %v3217_v37, 2  ;;  %v3247_v47 = vrot.slane %v3246_v33, 4  ;;  %v3276_v41 = vsel %vm2933_vm5, %v3274_v58, 0.0  ;;  %v3189_v8 = vrot.slane %v3188_v32, 1 }
 0x4e0   :  { %v3275_v59 = vsel %vm2933_vm5, %v3273_v34, 0.0  ;;  %v3301_v42 = vpop.permute.xlu0 %3300  ;;  %v5018_v18 = vsel %vm3416_vm8, %v3415_v38, %v3159_v44  ;;  %v408_v44 = vmul.f32 0.5, %v406_v20 }
 0x4e1   :  { %v3219_v30 = vadd.f32 %v3218_v35, %v3217_v37  ;;  %v3248_v3 = vadd.f32 %v3247_v47, %v3246_v33  ;;  %v3277_v45 = vadd.f32 %v3276_v41, %v3275_v59  ;;  %v3299_v49 = vpop.permute.xlu1 %3298  ;;  %v3305_v51 = vmul.f32 %v4927_v39, %v3301_v42 }
 0x4e2   :  { %v3304_v63 = vmul.f32 %v3299_v49, %v4930_v10  ;;  %v3190_v50 = vadd.f32 %v3189_v8, %v3188_v32  ;;  %v403_v39 = vmul.f32 0.5, %v4344_v27 }
 0x4e3   :  { %v3220_v52 = vrot.slane %v3219_v30, 1  ;;  %v3249_v22 = vrot.slane %v3248_v3, 2  ;;  %v3278_v0 = vrot.slane %v3277_v45, 4  ;;  %v3307_v56 = vsel %vm2933_vm5, %v3305_v51, 0.0 }
 0x4e4   :  { %v3306_v19 = vsel %vm2933_vm5, %v3304_v63, 0.0  ;;  %v3332_v53 = vpop.permute.xlu0 %3331  ;;  %4145 = vtanh.f32 %v403_v39  ;;  %v410_v51 = vmul.f32 %v408_v44, %v4337_v25 }
 0x4e5   :  { %v3221_v4 = vadd.f32 %v3220_v52, %v3219_v30  ;;  %v3250_v17 = vadd.f32 %v3249_v22, %v3248_v3  ;;  %v3279_v55 = vadd.f32 %v3278_v0, %v3277_v45  ;;  %v3308_v61 = vadd.f32 %v3307_v56, %v3306_v19  ;;  %v3330_v46 = vpop.permute.xlu1 %3329 }
 0x4e6   :  { %v3335_v57 = vmul.f32 %v3330_v46, %v4939_v36  ;;  %v3336_v10 = vmul.f32 %v4936_v1, %v3332_v53 }
 0x4e7   :  { %v3418_v14 = vsel %vm269_vm3, %v3190_v50, %v3221_v4  ;;  %v3251_v26 = vrot.slane %v3250_v17, 1  ;;  %v3280_v16 = vrot.slane %v3279_v55, 2  ;;  %v3309_v15 = vrot.slane %v3308_v61, 4 }
 0x4e8   :  { %v3337_v40 = vsel %vm2933_vm5, %v3335_v57, 0.0  ;;  %v3338_v5 = vsel %vm2933_vm5, %v3336_v10, 0.0  ;;  %v3363_v60 = vpop.permute.xlu0 %3362 }
 0x4e9   :  { %v3252_v13 = vadd.f32 %v3251_v26, %v3250_v17  ;;  %v3281_v23 = vadd.f32 %v3280_v16, %v3279_v55  ;;  %v3310_v2 = vadd.f32 %v3309_v15, %v3308_v61  ;;  %v3339_v62 = vadd.f32 %v3338_v5, %v3337_v40  ;;  %v3361_v12 = vpop.permute.xlu1 %3360 }
 0x4ea   :  { %v3366_v36 = vmul.f32 %v3361_v12, %v4946_v9  ;;  %v3367_v1 = vmul.f32 %v4943_v7, %v3363_v60  ;;  %v4057_v60 = vld [vmem:[%s5112_s5] sm:$0xff]  }
 0x4eb   :  { %v3282_v24 = vrot.slane %v3281_v23, 1  ;;  %v3311_v29 = vrot.slane %v3310_v2, 2  ;;  %v3340_v21 = vrot.slane %v3339_v62, 4  ;;  %v3419_v31 = vsel %vm304_vm4, %v3418_v14, %v3252_v13  ;;  %4011 = vmatpush3.bf16.msra.mxu1 %v4057_v60  ;;  %v4058_v13 = vld [vmem:[%s5112_s5 + $0x8] sm:$0xff]  }
 0x4ec   :  { %v3368_v48 = vsel %vm2933_vm5, %v3366_v36, 0.0  ;;  %v3369_v38 = vsel %vm2933_vm5, %v3367_v1, 0.0  ;;  %v3394_v32 = vpop.permute.xlu0 %3393  ;;  %4012 = vmatprep.subr.bf16.mxu1 %v4234_v11  ;;  %v4156_v36 = vld [vmem:[#allocation2 + $0x8] sm:$0xff] }
 0x4ed   :  { %v3283_v37 = vadd.f32 %v3282_v24, %v3281_v23  ;;  %v3312_v33 = vadd.f32 %v3311_v29, %v3310_v2  ;;  %v3341_v43 = vadd.f32 %v3340_v21, %v3339_v62  ;;  %v3370_v58 = vadd.f32 %v3369_v38, %v3368_v48  ;;  %v3392_v34 = vpop.permute.xlu1 %3391  ;;  %v4155_v23 = vld [vmem:[#allocation2] sm:$0xff] }
 0x4ee   :  { %v3397_v9 = vmul.f32 %v3392_v34, %v4956_v6  ;;  %v3398_v7 = vmul.f32 %v4953_v28, %v3394_v32  ;;  %v4146_v50 = vpop.eup %4145 }
 0x4ef   :  { %v3313_v35 = vrot.slane %v3312_v33, 1  ;;  %v3342_v47 = vrot.slane %v3341_v43, 2  ;;  %v3371_v41 = vrot.slane %v3370_v58, 4  ;;  %v3420_v8 = vsel %vm339_vm2, %v3419_v31, %v3283_v37  ;;  %4013 = vmatpush3.bf16.msra.mxu1 %v4058_v13 }
 0x4f0   :  { %v3399_v59 = vsel %vm2933_vm5, %v3397_v9, 0.0  ;;  %v3400_v42 = vsel %vm2933_vm5, %v3398_v7, 0.0  ;;  %v407_v46 = vadd.f32 1.0, %v4146_v50  ;;  %v3440_v26 = vpop.permute.xlu0 %3439 }
 0x4f1   :  { %v3314_v30 = vadd.f32 %v3313_v35, %v3312_v33  ;;  %v3343_v3 = vadd.f32 %v3342_v47, %v3341_v43  ;;  %v3372_v45 = vadd.f32 %v3371_v41, %v3370_v58  ;;  %v3401_v49 = vadd.f32 %v3400_v42, %v3399_v59  ;;  %v3438_v63 = vpop.permute.xlu1 %3437  ;;  %v4059_v35 = vld [vmem:[%s5113_s6] sm:$0xff]   ;;  %v4060_v47 = vld [vmem:[%s5113_s6 + $0x8] sm:$0xff]   ;;  %v4061_v41 = vld [vmem:[%s5113_s6 + $0x10] sm:$0xff]  }
 0x4f2   :  { %v3443_v6 = vadd.f32 %v3438_v63, %v5018_v18  ;;  %v409_v10 = vmul.f32 0.5, %v407_v46 }
 0x4f3   :  { %v3344_v28 = vrot.slane %v3343_v3, 1  ;;  %v3373_v52 = vrot.slane %v3372_v45, 2  ;;  %v3402_v22 = vrot.slane %v3401_v49, 4  ;;  %v3421_v0 = vsel %vm1461_vm10, %v3420_v8, %v3314_v30  ;;  %v4062_v8 = vld [vmem:[%s5113_s6 + $0x18] sm:$0xff]   ;;  %s4243_s6 = smov [#allocation7]  }
 0x4f4   :  { %v3445_v19 = vmul.f32 %v3443_v6, %v410_v51  ;;  %v411_v16 = vmul.f32 %v409_v10, %v4344_v27 }
 0x4f5   :  { %v3345_v56 = vadd.f32 %v3344_v28, %v3343_v3  ;;  %v3374_v53 = vadd.f32 %v3373_v52, %v3372_v45  ;;  %v3403_v4 = vadd.f32 %v3402_v22, %v3401_v49 }
 0x4f7   :  { %v3375_v17 = vrot.slane %v3374_v53, 1  ;;  %v3404_v55 = vrot.slane %v3403_v4, 2  ;;  %v3422_v61 = vsel %vm3412_vm6, %v3421_v0, %v3345_v56 }
 0x4f9   :  { %v3405_v54 = vadd.f32 %v3404_v55, %v3403_v4  ;;  %v3376_v57 = vadd.f32 %v3375_v17, %v3374_v53 }
 0x4fb   :  { %v3406_v25 = vrot.slane %v3405_v54, 1  ;;  %v3423_v18 = vsel %vm3414_vm7, %v3422_v61, %v3376_v57 }
 0x4fd   :  { %v3407_v39 = vadd.f32 %v3406_v25, %v3405_v54 }
 0x4ff   :  { %v3424_v14 = vsel %vm3416_vm8, %v3423_v18, %v3407_v39 }
 0x500   :  { %v3444_v15 = vadd.f32 %v3440_v26, %v3424_v14 }
 0x502   :  { %v3446_v40 = vmul.f32 %v3444_v15, %v411_v16 }
 0x504   :  { %v3447_v5 = vpack.c.bf16 %v3446_v40, %v3445_v19 }
 0x506   :  { %4007 = vmatmul.mubr.msk.bf16.vlgmr.msra.gmra.mrb[32].mxu0 %vm2933_vm5, %v3447_v5 }
 0x507   :  { %4026 = vmatprep.mubr.msk.bf16.mxu0 %vm4235_vm1, %v4234_v11  ;;  %4019 = vmatpush3.bf16.msra.mxu0 %v4059_v35 }
 0x508   :  { %4020 = vmatprep.subr.bf16.mxu0 %v4234_v11 }
 0x50b   :  { %4021 = vmatpush3.bf16.msra.mxu0 %v4060_v47 }
 0x50c   :  { %4022 = vmatprep.subr.bf16.mxu0 %v4234_v11 }
 0x50f   :  { %4023 = vmatpush3.bf16.msra.mxu0 %v4061_v41 }
 0x510   :  { %4024 = vmatprep.subr.bf16.mxu0 %v4234_v11 }
 0x513   :  { %4025 = vmatpush3.bf16.msra.mxu0 %v4062_v8 }
 0x5d9   :  { %v3517_v27 = vpop.f32.mrb[32].mxu0 }
 0x5da   :  { %v5057_v2 = vadd.f32 %v4155_v23, %v3517_v27  ;;  %v4008_v62 = vpop.f32.mrb[33].mxu0 }
 0x5db   :  { %v3520_v12 = vpop.f32.mrb[34].mxu0 }
 0x5dc   :  { %v5059_v1 = vadd.f32 %v4156_v36, %v3520_v12  ;;  %v4009_v20 = vpop.f32.mrb[35].mxu0  ;;  %v3524_v24 = vmul.f32 %v5057_v2, %v5057_v2 }
 0x5de   :  { %v3526_v29 = vsel %vm66_vm0, %v3524_v24, 0.0  ;;  %v3525_v21 = vmul.f32 %v5059_v1, %v5059_v1 }
 0x5df   :  { %3527 = vadd.xlane.f32.xlu1 %v3526_v29 }
 0x5e0   :  { %v3529_v31 = vsel %vm66_vm0, %v3525_v21, 0.0 }
 0x5e1   :  { %3530 = vadd.xlane.f32.xlu0 %v3529_v31 }
 0x66c   :  { %v3528_v48 = vpop.xlane.xlu1 %3527 }
 0x66d   :  { %v3532_v38 = vmul.f32 0.03125, %v3528_v48 }
 0x66e   :  { %v3531_v32 = vpop.xlane.xlu0 %3530 }
 0x66f   :  { %v3534_v37 = vadd.f32 1e-05, %v3532_v38  ;;  %v3533_v33 = vmul.f32 0.03125, %v3531_v32 }
 0x671   :  { %4147 = vrsqrt.f32 %v3534_v37  ;;  %v3535_v43 = vadd.f32 1e-05, %v3533_v33 }
 0x673   :  { %4149 = vrsqrt.f32 %v3535_v43 }
 0x67b   :  { %v4148_v58 = vpop.eup %4147 }
 0x67c   :  { %v3538_v9 = vmul.f32 %v4148_v58, %v5057_v2 }
 0x67d   :  { %v4150_v34 = vpop.eup %4149 }
 0x67e   :  { %v3539_v7 = vmul.f32 %v4150_v34, %v5059_v1 }
 0x680   :  { %v3540_v44 = vpack.c.bf16 %v3539_v7, %v3538_v9 }
 0x682   :  { %4015 = vmatmul.mubr.msk.bf16.vlgmr.msra.gmra.mrb[40].mxu1 %vm66_vm0, %v3540_v44 }
 0x755   :  { %v3594_v59 = vpop.f32.mrb[40].mxu1 }
 0x756   :  { %3613 = vrot.lane.b32.xlu0 %v3594_v59, %s4238_s1  ;;  %v4016_v42 = vpop.f32.mrb[41].mxu1  ;;  %v3601_v45 = vmul.f32 0.5, %v3594_v59 }
 0x757   :  { %v3597_v30 = vpop.f32.mrb[42].mxu1 }
 0x758   :  { %3615 = vrot.lane.b32.xlu1 %v3597_v30, %s4238_s1  ;;  %v4017_v3 = vpop.f32.mrb[43].mxu1  ;;  %v3602_v49 = vmul.f32 0.5, %v3597_v30  ;;  %4151 = vtanh.f32 %v3601_v45  ;;  %s3705_s1 = sshll.u32 %s4243_s6, 4  ;;  %s3706_s1 = int_to_ptr.vmem [resolvable:$true] %s3705_s1 }
 0x759   :  { %s4201_s21 = scalar_lea.vmem %s3706_s1, 256  ;;  %p4206_p3 = scmp.lt.s32.totalorder %s3706_s1, %s3706_s1 }
 0x75a   :  { %4153 = vtanh.f32 %v3602_v49  ;;  %p4202_p2 = scmp.ne.s32.totalorder %s3706_s1, %s4201_s21  ;;  %p4207_p4 = scmp.lt.s32.totalorder %s4201_s21, %s4201_s21 }
 0x75c   :  { %p4208_p5 = por %p4207_p4, %p4206_p3 }
 0x75e   :  { %p4209_p6 = pnand %p4208_p5, %p4202_p2 }
 0x762   :  { %v4152_v63 = vpop.eup %4151 }
 0x763   :  { %v3605_v11 = vadd.f32 1.0, %v4152_v63 }
 0x764   :  { %v4154_v51 = vpop.eup %4153 }
 0x765   :  { %v3606_v6 = vadd.f32 1.0, %v4154_v51  ;;  %v3607_v28 = vmul.f32 0.5, %v3605_v11 }
 0x767   :  { %v3608_v52 = vmul.f32 0.5, %v3606_v6  ;;  %v3609_v0 = vmul.f32 %v3607_v28, %v3594_v59 }
 0x769   :  { %v3610_v50 = vmul.f32 %v3608_v52, %v3597_v30 }
 0x7c8   :  { %v3614_v22 = vpop.permute.xlu0 %3613 }
 0x7c9   :  { %v3619_v56 = vmul.f32 %v3614_v22, %v3609_v0 }
 0x7ca   :  { %v3616_v19 = vpop.permute.xlu1 %3615 }
 0x7cb   :  { %v3620_v53 = vmul.f32 %v3616_v19, %v3610_v50 }
 0x7cd   :  { %v3621_v4 = vpack.c.bf16 %v3620_v53, %v3619_v56 }
 0x7cf   :  { %4027 = vmatmul.mubr.msk.bf16.vlgmr.msra.gmra.mrb[36].mxu0 %vm2933_vm5, %v3621_v4 }
 0x8a2   :  { %v3691_v17 = vpop.f32.mrb[36].mxu0 }
 0x8a3   :  { %v3692_v55 = vadd.f32 %v3691_v17, %v5057_v2  ;;  %v4028_v61 = vpop.f32.mrb[37].mxu0 }
 0x8a4   :  { %v3694_v46 = vpop.f32.mrb[38].mxu0 }
 0x8a5   :  { %3698 = vst.msk [vmem:[#allocation7] sm:$0xff] %vm66_vm0, %v3692_v55  ;;  %v3695_v54 = vadd.f32 %v3694_v46, %v5059_v1  ;;  %v4029_v57 = vpop.f32.mrb[39].mxu0 }
 0x8a7   :  { %3699 = vst.msk [vmem:[#allocation7 + $0x8] sm:$0xff] %vm66_vm0, %v3695_v54 }
 0x8a8   :  { %4212 = shalt.err (!%p4209_p6)
}
 0x8a9   :  { %s4213_s24 = scalar_lea.hbm %s5114_s7, 256 }
 0x8aa   :  { %p4214_p7 = scmp.ne.s32.totalorder %s5114_s7, %s4213_s24  ;;  %p4217_p8 = scmp.lt.u32.totalorder %s4213_s24, %s5114_s7 }
 0x8ac   :  { %p4219_p9 = pnand %p4217_p8, %p4214_p7 }
 0x8ae   :  { %4222 = shalt.err (!%p4219_p9)
}
 0x8af   :  { %3711 = dma.vmem_to_hbm [thread:$0]  %s3706_s1, 256, %s5114_s7, [#allocation4], %s4230_s11, %s4230_s11, %s4231_s12  }
 0x8b0   :  { %4227 = dma.done.wait [#allocation4], 256  }
 0x8b1   :  { %4228 = vsyncadd [#allocation4], 4294967040 }
 0x8b2   :  { %3715 = vsyncpa [#allocation3], 1 }
 0x8b3   :  { %3716 = vsyncpa [#allocation6], 1 }
 0x8b4   :  { %3717 = vsyncpa [#allocation4], 1 }

</bundles_post_ra>
